<compile_context>
chip_gen: v6e
topology: v6e:2x2x1
jax: 0.10.0
libtpu: 0.0.40
codegen_flags: <defaults>
</compile_context>

<pallas_src>
import functools
import math

import jax
import jax.numpy as jnp
from jax.experimental import pallas as pl
from jax.experimental.pallas import tpu as pltpu

EPS = 1e-5
LANE = 128
TM_CAP = 1024


# ------------------------------ small helpers ------------------------------
def _round_up(x, m):
    return (x + m - 1) // m * m


def _m_tiling(m):
    """Row-tile size TM (multiple of 8, <= TM_CAP) and padded M; nt >= 2 if possible."""
    m8 = _round_up(m, 8)
    tm = min(TM_CAP, m8)
    if m8 // tm < 2 and m8 >= 16:        # guarantee >=2 grid steps for v7x megacore
        tm = _round_up((m8 + 1) // 2, 8)
    m_pad = _round_up(m8, tm)
    return m_pad, tm


def _pad_rows(a, m_pad):
    m = a.shape[0]
    return a if m == m_pad else jnp.pad(a, ((0, m_pad - m), (0, 0)))


def _pad_cols(a, c_pad):
    c = a.shape[1]
    return a if c == c_pad else jnp.pad(a, ((0, 0), (0, c_pad - c)))


def _pad_vec(v, c_pad):
    c = v.shape[0]
    return v if c == c_pad else jnp.pad(v, (0, c_pad - c))


def _tile_counts(m_true, tm, nt):
    """Number of valid (non-padded) rows per tile, as a tiny f32 vector."""
    return jnp.asarray([float(min(tm, m_true - i * tm)) for i in range(nt)],
                       jnp.float32)


def _vmem_limit(blocks):
    """Derive vmem_limit_bytes from actual per-step block bytes (v7x-safe clamp)."""
    bb = sum(math.prod(s) * jnp.dtype(d).itemsize for s, d in blocks)
    return int(min(48 << 20, max(8 << 20, 8 * bb)))


# ------------------------------ Pallas kernels ------------------------------
def _conv_stats_kernel(*refs, tm, m_true, n_mats):
    """Pass A: conv-as-matmul (bf16 in, f32 acc) -> per-tile BN partial stats only.

    For matmul m: row 2*m   = per-tile column sums of y
                  row 2*m+1 = per-tile sum of squared deviations from the tile mean
    (shifted form, padded rows masked out); remaining rows zero so the stats block
    stays (8, 128)-aligned.  The conv output y itself is never written to HBM.
    """
    stats_ref = refs[-1]
    c_pad = stats_ref.shape[1]
    base = pl.program_id(0) * tm
    cnt = jnp.maximum(jnp.minimum(tm, m_true - base), 1).astype(jnp.float32)
    rid = jax.lax.broadcasted_iota(jnp.int32, (tm, 1), 0) + base
    valid = (rid < m_true).astype(jnp.float32)
    rows = []
    for m in range(n_mats):
        y = jnp.dot(refs[2 * m][...], refs[2 * m + 1][...],
                    preferred_element_type=jnp.float32)
        s = jnp.sum(y, axis=0, keepdims=True)        # padded rows of y are exactly 0
        dev = (y - s / cnt) * valid                  # shift by tile mean, mask padding
        rows += [s, jnp.sum(dev * dev, axis=0, keepdims=True)]
    zeros = jnp.zeros((8 - 2 * n_mats, c_pad), jnp.float32)
    stats_ref[...] = jnp.concatenate(rows + [zeros], axis=0)


def _conv_bn_apply_kernel(*refs, res_mode, planes):
    """Pass B: recompute conv matmul, apply fused BN affine, (+residual), ReLU.

    Outputs stored at true channel width (planes) - no 128-lane zero padding.
    res_mode: None (conv1), "id" (identity residual), "down" (recompute 1x1
    downsample conv in-kernel and fuse its BN affine into the residual add).
    """
    if res_mode == "down":
        (p_ref, w_ref, sc_ref, sh_ref,
         xs_ref, wd_ref, dsc_ref, dsh_ref, bn_ref, out_ref) = refs
    elif res_mode == "id":
        p_ref, w_ref, sc_ref, sh_ref, res_ref, bn_ref, out_ref = refs
    else:
        p_ref, w_ref, sc_ref, sh_ref, bn_ref, out_ref = refs

    y = jnp.dot(p_ref[...], w_ref[...], preferred_element_type=jnp.float32)
    bn = y * sc_ref[...] + sh_ref[...]
    bn_ref[...] = bn[:, :planes]
    z = bn[:, :planes]
    if res_mode == "down":
        yd = jnp.dot(xs_ref[...], wd_ref[...], preferred_element_type=jnp.float32)
        ds = yd * dsc_ref[...] + dsh_ref[...]
        z = z + ds[:, :planes]
    elif res_mode == "id":
        z = z + res_ref[...]
    out_ref[...] = jnp.maximum(z, 0.0).astype(out_ref.dtype)


# ------------------------------ kernel wrappers ------------------------------
def conv_stats_pallas(mats, tm, m_true, planes):
    """mats: list of (lhs [m_pad,K] bf16, rhs [K,Cpad] bf16) pairs (1 or 2).

    Returns stats [nt*8, Cpad]: per-tile sums / shifted sums-of-squares per matmul."""
    m_pad = mats[0][0].shape[0]
    c_pad = mats[0][1].shape[1]
    nt = m_pad // tm
    inputs, in_specs, blocks = [], [], []
    for lhs, rhs in mats:
        k = lhs.shape[1]
        inputs += [lhs, rhs]
        in_specs += [pl.BlockSpec((tm, k), lambda i: (i, 0)),
                     pl.BlockSpec((k, c_pad), lambda i: (0, 0))]
        blocks += [((tm, k), lhs.dtype), ((k, c_pad), rhs.dtype)]
    blocks += [((8, c_pad), jnp.float32), ((tm, c_pad), jnp.float32)]  # stats + y temp

    flops = sum(2 * m_true * lhs.shape[1] * planes for lhs, _ in mats)
    bytes_acc = (sum(int(a.size) * a.dtype.itemsize for a in inputs)
                 + nt * 8 * c_pad * 4)
    kernel = functools.partial(_conv_stats_kernel, tm=tm, m_true=m_true,
                               n_mats=len(mats))
    return pl.pallas_call(
        kernel,
        grid=(nt,),
        in_specs=in_specs,
        out_specs=pl.BlockSpec((8, c_pad), lambda i: (i, 0)),
        out_shape=jax.ShapeDtypeStruct((nt * 8, c_pad), jnp.float32),
        compiler_params=pltpu.CompilerParams(
            dimension_semantics=("parallel",),
            vmem_limit_bytes=_vmem_limit(blocks)),
        cost_estimate=pl.CostEstimate(flops=int(flops), transcendentals=0,
                                      bytes_accessed=int(bytes_acc)),
    )(*inputs)


def stats_to_affine(stats, gamma_pad, beta_pad, counts, m_true, row0=0):
    """Cross-tile parallel-variance (Chan) combine -> fused BN scale/shift (tiny)."""
    c_pad = stats.shape[1]
    st = stats.reshape(-1, 8, c_pad)
    s_i = st[:, row0, :]                      # per-tile sums
    q_i = st[:, row0 + 1, :]                  # per-tile sum((y - tile_mean)^2)
    n_i = counts.reshape(-1, 1)
    mean = jnp.sum(s_i, axis=0) / m_true
    m2 = jnp.sum(q_i, axis=0) + jnp.sum(n_i * (s_i / n_i - mean) ** 2, axis=0)
    var = m2 / m_true                         # biased variance (training-mode BN)
    scale = gamma_pad * jax.lax.rsqrt(var + EPS)
    shift = beta_pad - mean * scale
    return scale.reshape(1, c_pad), shift.reshape(1, c_pad)


def conv_bn_apply_pallas(patches, w_mat, scale, shift, tm, planes,
                         residual=None, down=None, out_dtype=jnp.float32):
    """Recompute conv, apply BN affine (+ fused residual branch), ReLU.

    Returns (bn [m_pad, planes] f32, out [m_pad, planes] out_dtype)."""
    m_pad, K = patches.shape
    c_pad = w_mat.shape[1]
    nt = m_pad // tm
    res_mode = "down" if down is not None else ("id" if residual is not None else None)

    inputs = [patches, w_mat, scale, shift]
    in_specs = [pl.BlockSpec((tm, K), lambda i: (i, 0)),
                pl.BlockSpec((K, c_pad), lambda i: (0, 0)),
                pl.BlockSpec((1, c_pad), lambda i: (0, 0)),
                pl.BlockSpec((1, c_pad), lambda i: (0, 0))]
    blocks = [((tm, K), patches.dtype), ((K, c_pad), w_mat.dtype),
              ((1, c_pad), jnp.float32), ((1, c_pad), jnp.float32)]
    flops = 2 * m_pad * K * planes + 4 * m_pad * planes

    if res_mode == "down":
        xs, wd, dsc, dsh = down
        cd = xs.shape[1]
        inputs += [xs, wd, dsc, dsh]
        in_specs += [pl.BlockSpec((tm, cd), lambda i: (i, 0)),
                     pl.BlockSpec((cd, c_pad), lambda i: (0, 0)),
                     pl.BlockSpec((1, c_pad), lambda i: (0, 0)),
                     pl.BlockSpec((1, c_pad), lambda i: (0, 0))]
        blocks += [((tm, cd), xs.dtype), ((cd, c_pad), wd.dtype),
                   ((1, c_pad), jnp.float32), ((1, c_pad), jnp.float32)]
        flops += 2 * m_pad * cd * planes
    elif res_mode == "id":
        inputs.append(residual)
        in_specs.append(pl.BlockSpec((tm, planes), lambda i: (i, 0)))
        blocks.append(((tm, planes), residual.dtype))

    blocks += [((tm, planes), jnp.float32), ((tm, planes), out_dtype),
               ((tm, c_pad), jnp.float32)]       # bn out, act out, in-kernel y temp
    bytes_acc = (sum(int(a.size) * a.dtype.itemsize for a in inputs)
                 + m_pad * planes * (4 + jnp.dtype(out_dtype).itemsize))

    kernel = functools.partial(_conv_bn_apply_kernel, res_mode=res_mode, planes=planes)
    bn, out = pl.pallas_call(
        kernel,
        grid=(nt,),
        in_specs=in_specs,
        out_specs=(pl.BlockSpec((tm, planes), lambda i: (i, 0)),
                   pl.BlockSpec((tm, planes), lambda i: (i, 0))),
        out_shape=(jax.ShapeDtypeStruct((m_pad, planes), jnp.float32),
                   jax.ShapeDtypeStruct((m_pad, planes), out_dtype)),
        compiler_params=pltpu.CompilerParams(
            dimension_semantics=("parallel",),
            vmem_limit_bytes=_vmem_limit(blocks)),
        cost_estimate=pl.CostEstimate(flops=int(flops), transcendentals=0,
                                      bytes_accessed=int(bytes_acc)),
    )(*inputs)
    return bn, out


# ------------------------------ JAX glue ------------------------------
def im2col(x_nhwc, ksize, stride, pad):
    """Extract conv patches -> [N*Ho*Wo, k*k*C] (layout plumbing only)."""
    N, H, W, C = x_nhwc.shape
    xp = jnp.pad(x_nhwc, ((0, 0), (pad, pad), (pad, pad), (0, 0)))
    Ho = (H + 2 * pad - ksize) // stride + 1
    Wo = (W + 2 * pad - ksize) // stride + 1
    taps = []
    for dy in range(ksize):
        for dx in range(ksize):
            taps.append(xp[:, dy:dy + (Ho - 1) * stride + 1:stride,
                            dx:dx + (Wo - 1) * stride + 1:stride, :])
    p = jnp.stack(taps, axis=3)  # [N, Ho, Wo, k*k, C]
    return p.reshape(N * Ho * Wo, ksize * ksize * C), (N, Ho, Wo)


def weight_to_mat(w_oihw, c_pad):
    """[Cout, Cin, kh, kw] -> [kh*kw*Cin, Cpad] (output channels zero-padded to 128)."""
    cout, cin, kh, kw = w_oihw.shape
    w = jnp.transpose(w_oihw, (2, 3, 1, 0)).reshape(kh * kw * cin, cout)
    return _pad_cols(w, c_pad)


def basic_block_forward(x_nhwc, p):
    """BasicBlock forward; returns (out_nhwc, [bn1_nhwc, bn2_nhwc])."""
    stride = p["stride"]
    N, H, W, c_in = x_nhwc.shape
    planes = p["conv1_w"].shape[0]
    c_pad = _round_up(planes, LANE)

    # ---- conv1 (3x3, stride) + bn1 + relu ----
    patches1, (_, Ho, Wo) = im2col(x_nhwc, 3, stride, 1)
    M = N * Ho * Wo
    m_pad, tm = _m_tiling(M)
    nt = m_pad // tm
    counts = _tile_counts(M, tm, nt)
    patches1 = _pad_rows(patches1.astype(jnp.bfloat16), m_pad)
    w1 = weight_to_mat(p["conv1_w"], c_pad).astype(jnp.bfloat16)

    st1 = conv_stats_pallas([(patches1, w1)], tm, M, planes)
    sc1, sh1 = stats_to_affine(st1, _pad_vec(p["bn1_g"], c_pad),
                               _pad_vec(p["bn1_b"], c_pad), counts, float(M))
    bn1, h = conv_bn_apply_pallas(patches1, w1, sc1, sh1, tm, planes,
                                  out_dtype=jnp.bfloat16)

    # ---- conv2 (3x3, stride 1) + bn2 (+ residual) + relu ----
    h_nhwc = h[:M].reshape(N, Ho, Wo, planes)            # bf16 activation
    patches2, _ = im2col(h_nhwc, 3, 1, 1)
    patches2 = _pad_rows(patches2, m_pad)
    w2 = weight_to_mat(p["conv2_w"], c_pad).astype(jnp.bfloat16)
    g2 = _pad_vec(p["bn2_g"], c_pad)
    b2 = _pad_vec(p["bn2_b"], c_pad)

    if "down_w" in p:
        # 1x1 strided conv: the strided slice of x is the matmul LHS (no im2col).
        # Its stats share conv2's stats kernel, and its matmul + BN affine are
        # recomputed in conv2's apply kernel -> the downsample branch never hits HBM.
        xs = _pad_rows(x_nhwc[:, ::stride, ::stride, :].reshape(M, c_in)
                       .astype(jnp.bfloat16), m_pad)
        wd = weight_to_mat(p["down_w"], c_pad).astype(jnp.bfloat16)
        st = conv_stats_pallas([(patches2, w2), (xs, wd)], tm, M, planes)
        sc2, sh2 = stats_to_affine(st, g2, b2, counts, float(M), row0=0)
        scd, shd = stats_to_affine(st, _pad_vec(p["down_g"], c_pad),
                                   _pad_vec(p["down_b"], c_pad), counts, float(M),
                                   row0=2)
        bn2, out = conv_bn_apply_pallas(patches2, w2, sc2, sh2, tm, planes,
                                        down=(xs, wd, scd, shd))
    else:
        res = _pad_rows(x_nhwc.reshape(M, planes), m_pad)   # identity, true width
        st = conv_stats_pallas([(patches2, w2)], tm, M, planes)
        sc2, sh2 = stats_to_affine(st, g2, b2, counts, float(M), row0=0)
        bn2, out = conv_bn_apply_pallas(patches2, w2, sc2, sh2, tm, planes,
                                        residual=res)

    out_nhwc = out[:M].reshape(N, Ho, Wo, planes)
    bn1_nhwc = bn1[:M].reshape(N, Ho, Wo, planes)
    bn2_nhwc = bn2[:M].reshape(N, Ho, Wo, planes)
    return out_nhwc, [bn1_nhwc, bn2_nhwc]


def layer_block_forward(x_nchw, block_params):
    """LayerBlock.forward: x (NCHW) -> (x_out NCHW, list of BN outputs NCHW)."""
    x = jnp.transpose(x_nchw, (0, 2, 3, 1))  # NCHW -> NHWC (kernel layout)
    bn_outputs = []
    for p in block_params:
        x, bns = basic_block_forward(x, p)
        bn_outputs.extend(jnp.transpose(b, (0, 3, 1, 2)) for b in bns)
    return jnp.transpose(x, (0, 3, 1, 2)), bn_outputs


def init_basic_block(key, inplanes, planes, stride):
    ks = jax.random.split(key, 8)
    p = {
        "stride": stride,
        "conv1_w": 0.1 * jax.random.normal(ks[0], (planes, inplanes, 3, 3), jnp.float32),
        "bn1_g": 1.0 + 0.1 * jax.random.normal(ks[1], (planes,), jnp.float32),
        "bn1_b": 0.1 * jax.random.normal(ks[2], (planes,), jnp.float32),
        "conv2_w": 0.1 * jax.random.normal(ks[3], (planes, planes, 3, 3), jnp.float32),
        "bn2_g": 1.0 + 0.1 * jax.random.normal(ks[4], (planes,), jnp.float32),
        "bn2_b": 0.1 * jax.random.normal(ks[5], (planes,), jnp.float32),
    }
    if stride != 1 or inplanes != planes:  # downsample = conv1x1 + BN
        p["down_w"] = 0.1 * jax.random.normal(ks[6], (planes, inplanes, 1, 1), jnp.float32)
        p["down_g"] = 1.0 + 0.05 * jax.random.normal(ks[7], (planes,), jnp.float32)
        p["down_b"] = jnp.zeros((planes,), jnp.float32)
    return p


# ------------------------------ pure-JAX reference ------------------------------
def _ref_conv(x_nhwc, w_oihw, stride, pad):
    # bf16 operands / f32 accumulation, mirroring the kernel's MXU precision.
    return jax.lax.conv_general_dilated(
        x_nhwc.astype(jnp.bfloat16),
        jnp.transpose(w_oihw, (2, 3, 1, 0)).astype(jnp.bfloat16),
        window_strides=(stride, stride), padding=[(pad, pad), (pad, pad)],
        dimension_numbers=("NHWC", "HWIO", "NHWC"),
        preferred_element_type=jnp.float32)


def _ref_bn(y, gamma, beta):
    mean = jnp.mean(y, axis=(0, 1, 2), keepdims=True)
    var = jnp.mean((y - mean) ** 2, axis=(0, 1, 2), keepdims=True)
    return (y - mean) * jax.lax.rsqrt(var + EPS) * gamma + beta


def reference_layer(x_nchw, block_params):
    x = jnp.transpose(x_nchw, (0, 2, 3, 1))
    bns = []
    for p in block_params:
        stride = p["stride"]
        bn1 = _ref_bn(_ref_conv(x, p["conv1_w"], stride, 1), p["bn1_g"], p["bn1_b"])
        h = jnp.maximum(bn1, 0.0)
        bn2 = _ref_bn(_ref_conv(h, p["conv2_w"], 1, 1), p["bn2_g"], p["bn2_b"])
        if "down_w" in p:
            ident = _ref_bn(_ref_conv(x, p["down_w"], stride, 0), p["down_g"], p["down_b"])
        else:
            ident = x
        x = jnp.maximum(bn2 + ident, 0.0)
        bns.extend([bn1, bn2])
    return (jnp.transpose(x, (0, 3, 1, 2)),
            [jnp.transpose(b, (0, 3, 1, 2)) for b in bns])


# -------------------------------- main --------------------------------
if __name__ == "__main__":
    key = jax.random.PRNGKey(0)
    kx, k1, k2 = jax.random.split(key, 3)

    # LayerBlock(BasicBlock, inplanes=4, planes=8, num_blocks=2, stride=2)
    inplanes, planes, num_blocks, stride = 4, 8, 2, 2
    x = jax.random.normal(kx, (2, inplanes, 16, 16), jnp.float32)  # NCHW input

    block_params = [
        init_basic_block(k1, inplanes, planes, stride),  # block 0 (has downsample)
        init_basic_block(k2, planes, planes, 1),         # block 1
    ]

    fwd = jax.jit(lambda xx: layer_block_forward(xx, block_params))
    out, bn_outputs = fwd(x)
    out = jax.block_until_ready(out)
    for b in bn_outputs:
        jax.block_until_ready(b)

    assert out.shape == (2, planes, 8, 8)
    assert len(bn_outputs) == 2 * num_blocks
    assert bool(jnp.all(jnp.isfinite(out)))

    # Correctness vs. pure-JAX reference (same bf16 matmul precision).
    ref_out, ref_bns = reference_layer(x, block_params)
    assert bool(jnp.allclose(out, ref_out, rtol=2e-2, atol=2e-2))
    for a, b in zip(bn_outputs, ref_bns):
        assert bool(jnp.allclose(a, b, rtol=2e-2, atol=2e-2))

    print("KERNEL_OK")
</pallas_src>

<mosaic_0001>
module attributes {stable_mosaic.version = 11 : i64} {
  func.func @_conv_stats_kernel(%arg0: i32, %arg1: memref<64x36xbf16, #tpu.memory_space<vmem>>, %arg2: memref<36x128xbf16, #tpu.memory_space<vmem>>, %arg3: memref<8x128xf32, #tpu.memory_space<vmem>>) attributes {dimension_semantics = [#tpu.dimension_semantics<parallel>], iteration_bounds = array<i64: 2>, scalar_prefetch = 0 : i64, scratch_operands = 0 : i64, tpu.core_type = #tpu.core_type<tc>, window_params = [{transform_indices = @transform_0, window_bounds = array<i64: 64, 36>}, {pipeline_mode = #tpu.pipeline_mode<synchronous>, transform_indices = @transform_1, window_bounds = array<i64: 36, 128>}, {transform_indices = @transform_2, window_bounds = array<i64: 8, 128>}]} {
    %c64_i32 = arith.constant 64 : i32
    %0 = arith.muli %arg0, %c64_i32 : i32
    %c128_i32 = arith.constant 128 : i32
    %1 = arith.subi %c128_i32, %0 : i32
    %c64_i32_0 = arith.constant 64 : i32
    %2 = arith.minsi %c64_i32_0, %1 : i32
    %c1_i32 = arith.constant 1 : i32
    %3 = arith.maxsi %2, %c1_i32 : i32
    %4 = arith.sitofp %3 : i32 to f32
    %5 = tpu.iota {dimensions = array<i32: 0>} : vector<64x1xi32>
    %6 = vector.broadcast %0 : i32 to vector<64x1xi32>
    %7 = arith.addi %5, %6 : vector<64x1xi32>
    %c128_i32_1 = arith.constant 128 : i32
    %8 = vector.broadcast %c128_i32_1 : i32 to vector<64x1xi32>
    %9 = arith.cmpi slt, %7, %8 : vector<64x1xi32>
    %10 = arith.extui %9 : vector<64x1xi1> to vector<64x1xi32>
    %11 = arith.sitofp %10 : vector<64x1xi32> to vector<64x1xf32>
    %c0 = arith.constant 0 : index
    %c0_2 = arith.constant 0 : index
    %12 = vector.load %arg1[%c0, %c0_2] : memref<64x36xbf16, #tpu.memory_space<vmem>>, vector<64x36xbf16>
    %c0_3 = arith.constant 0 : index
    %c0_4 = arith.constant 0 : index
    %13 = vector.load %arg2[%c0_3, %c0_4] : memref<36x128xbf16, #tpu.memory_space<vmem>>, vector<36x128xbf16>
    %cst = arith.constant dense<0.000000e+00> : vector<64x128xf32>
    %14 = tpu.matmul %12, %13, %cst {dimension_numbers = #tpu.dot_dimension_numbers<[1], [0], [0], [1], [0, 0, 1, 1], [], []>} : vector<64x36xbf16>, vector<36x128xbf16>, vector<64x128xf32> -> vector<64x128xf32>
    %cst_5 = arith.constant dense<0.000000e+00> : vector<128xf32>
    %15 = vector.multi_reduction <add>, %14, %cst_5 [0] : vector<64x128xf32> to vector<128xf32>
    %16 = vector.shape_cast %15 : vector<128xf32> to vector<1x128xf32>
    %17 = vector.broadcast %4 : f32 to vector<1x128xf32>
    %18 = arith.divf %16, %17 : vector<1x128xf32>
    %19 = vector.broadcast %18 : vector<1x128xf32> to vector<64x128xf32>
    %20 = arith.subf %14, %19 : vector<64x128xf32>
    %21 = vector.broadcast %11 : vector<64x1xf32> to vector<64x128xf32>
    %22 = arith.mulf %20, %21 : vector<64x128xf32>
    %23 = arith.mulf %22, %22 : vector<64x128xf32>
    %cst_6 = arith.constant dense<0.000000e+00> : vector<128xf32>
    %24 = vector.multi_reduction <add>, %23, %cst_6 [0] : vector<64x128xf32> to vector<128xf32>
    %25 = vector.shape_cast %24 : vector<128xf32> to vector<1x128xf32>
    %cst_7 = arith.constant 0.000000e+00 : f32
    %26 = vector.broadcast %cst_7 : f32 to vector<6x128xf32>
    %27 = tpu.concatenate %16, %25, %26 in 0 : vector<1x128xf32>, vector<1x128xf32>, vector<6x128xf32> -> vector<8x128xf32>
    %c0_8 = arith.constant 0 : index
    %c0_9 = arith.constant 0 : index
    %28 = vector.load %arg3[%c0_8, %c0_9] : memref<8x128xf32, #tpu.memory_space<vmem>>, vector<8x128xf32>
    tpu.vector_store %arg3[%c0_8, %c0_9], %27 {strides = array<i32>} : memref<8x128xf32, #tpu.memory_space<vmem>>, vector<8x128xf32>,
    return
  }
  func.func @transform_0(%arg0: i32) -> (i32, i32) {
    %c0_i32 = arith.constant 0 : i32
    %c0_i32_0 = arith.constant 0 : i32
    return %arg0, %c0_i32 : i32, i32
  }
  func.func @transform_1(%arg0: i32) -> (i32, i32) {
    %c0_i32 = arith.constant 0 : i32
    %c0_i32_0 = arith.constant 0 : i32
    %c0_i32_1 = arith.constant 0 : i32
    return %c0_i32, %c0_i32_0 : i32, i32
  }
  func.func @transform_2(%arg0: i32) -> (i32, i32) {
    %c0_i32 = arith.constant 0 : i32
    %c0_i32_0 = arith.constant 0 : i32
    return %arg0, %c0_i32 : i32, i32
  }
}

module attributes {stable_mosaic.version = 11 : i64} {
  func.func @_conv_bn_apply_kernel(%arg0: i32, %arg1: memref<64x36xbf16, #tpu.memory_space<vmem>>, %arg2: memref<36x128xbf16, #tpu.memory_space<vmem>>, %arg3: memref<1x128xf32, #tpu.memory_space<vmem>>, %arg4: memref<1x128xf32, #tpu.memory_space<vmem>>, %arg5: memref<64x8xf32, #tpu.memory_space<vmem>>, %arg6: memref<64x8xbf16, #tpu.memory_space<vmem>>) attributes {dimension_semantics = [#tpu.dimension_semantics<parallel>], iteration_bounds = array<i64: 2>, scalar_prefetch = 0 : i64, scratch_operands = 0 : i64, tpu.core_type = #tpu.core_type<tc>, window_params = [{transform_indices = @transform_0, window_bounds = array<i64: 64, 36>}, {pipeline_mode = #tpu.pipeline_mode<synchronous>, transform_indices = @transform_1, window_bounds = array<i64: 36, 128>}, {pipeline_mode = #tpu.pipeline_mode<synchronous>, transform_indices = @transform_2, window_bounds = array<i64: 1, 128>}, {pipeline_mode = #tpu.pipeline_mode<synchronous>, transform_indices = @transform_3, window_bounds = array<i64: 1, 128>}, {transform_indices = @transform_4, window_bounds = array<i64: 64, 8>}, {transform_indices = @transform_5, window_bounds = array<i64: 64, 8>}]} {
    %c0 = arith.constant 0 : index
    %c0_0 = arith.constant 0 : index
    %0 = vector.load %arg1[%c0, %c0_0] : memref<64x36xbf16, #tpu.memory_space<vmem>>, vector<64x36xbf16>
    %c0_1 = arith.constant 0 : index
    %c0_2 = arith.constant 0 : index
    %1 = vector.load %arg2[%c0_1, %c0_2] : memref<36x128xbf16, #tpu.memory_space<vmem>>, vector<36x128xbf16>
    %cst = arith.constant dense<0.000000e+00> : vector<64x128xf32>
    %2 = tpu.matmul %0, %1, %cst {dimension_numbers = #tpu.dot_dimension_numbers<[1], [0], [0], [1], [0, 0, 1, 1], [], []>} : vector<64x36xbf16>, vector<36x128xbf16>, vector<64x128xf32> -> vector<64x128xf32>
    %c0_3 = arith.constant 0 : index
    %c0_4 = arith.constant 0 : index
    %3 = vector.load %arg3[%c0_3, %c0_4] : memref<1x128xf32, #tpu.memory_space<vmem>>, vector<1x128xf32>
    %4 = vector.broadcast %3 : vector<1x128xf32> to vector<64x128xf32>
    %5 = arith.mulf %2, %4 : vector<64x128xf32>
    %c0_5 = arith.constant 0 : index
    %c0_6 = arith.constant 0 : index
    %6 = vector.load %arg4[%c0_5, %c0_6] : memref<1x128xf32, #tpu.memory_space<vmem>>, vector<1x128xf32>
    %7 = vector.broadcast %6 : vector<1x128xf32> to vector<64x128xf32>
    %8 = arith.addf %5, %7 : vector<64x128xf32>
    %9 = vector.extract_strided_slice %8 {offsets = [0, 0], sizes = [64, 8], strides = [1, 1]} : vector<64x128xf32> to vector<64x8xf32>
    %c0_7 = arith.constant 0 : index
    %c0_8 = arith.constant 0 : index
    %10 = vector.load %arg5[%c0_7, %c0_8] : memref<64x8xf32, #tpu.memory_space<vmem>>, vector<64x8xf32>
    tpu.vector_store %arg5[%c0_7, %c0_8], %9 {strides = array<i32>} : memref<64x8xf32, #tpu.memory_space<vmem>>, vector<64x8xf32>,
    %11 = vector.extract_strided_slice %8 {offsets = [0, 0], sizes = [64, 8], strides = [1, 1]} : vector<64x128xf32> to vector<64x8xf32>
    %cst_9 = arith.constant 0.000000e+00 : f32
    %12 = vector.broadcast %cst_9 : f32 to vector<64x8xf32>
    %13 = arith.maximumf %11, %12 : vector<64x8xf32>
    %14 = arith.truncf %13 : vector<64x8xf32> to vector<64x8xbf16>
    %c0_10 = arith.constant 0 : index
    %c0_11 = arith.constant 0 : index
    %15 = vector.load %arg6[%c0_10, %c0_11] : memref<64x8xbf16, #tpu.memory_space<vmem>>, vector<64x8xbf16>
    tpu.vector_store %arg6[%c0_10, %c0_11], %14 {strides = array<i32>} : memref<64x8xbf16, #tpu.memory_space<vmem>>, vector<64x8xbf16>,
    return
  }
  func.func @transform_0(%arg0: i32) -> (i32, i32) {
    %c0_i32 = arith.constant 0 : i32
    %c0_i32_0 = arith.constant 0 : i32
    return %arg0, %c0_i32 : i32, i32
  }
  func.func @transform_1(%arg0: i32) -> (i32, i32) {
    %c0_i32 = arith.constant 0 : i32
    %c0_i32_0 = arith.constant 0 : i32
    %c0_i32_1 = arith.constant 0 : i32
    return %c0_i32, %c0_i32_0 : i32, i32
  }
  func.func @transform_2(%arg0: i32) -> (i32, i32) {
    %c0_i32 = arith.constant 0 : i32
    %c0_i32_0 = arith.constant 0 : i32
    %c0_i32_1 = arith.constant 0 : i32
    return %c0_i32, %c0_i32_0 : i32, i32
  }
  func.func @transform_3(%arg0: i32) -> (i32, i32) {
    %c0_i32 = arith.constant 0 : i32
    %c0_i32_0 = arith.constant 0 : i32
    %c0_i32_1 = arith.constant 0 : i32
    return %c0_i32, %c0_i32_0 : i32, i32
  }
  func.func @transform_4(%arg0: i32) -> (i32, i32) {
    %c0_i32 = arith.constant 0 : i32
    %c0_i32_0 = arith.constant 0 : i32
    return %arg0, %c0_i32 : i32, i32
  }
  func.func @transform_5(%arg0: i32) -> (i32, i32) {
    %c0_i32 = arith.constant 0 : i32
    %c0_i32_0 = arith.constant 0 : i32
    return %arg0, %c0_i32 : i32, i32
  }
}

module attributes {stable_mosaic.version = 11 : i64} {
  func.func @_conv_stats_kernel(%arg0: i32, %arg1: memref<64x72xbf16, #tpu.memory_space<vmem>>, %arg2: memref<72x128xbf16, #tpu.memory_space<vmem>>, %arg3: memref<64x4xbf16, #tpu.memory_space<vmem>>, %arg4: memref<4x128xbf16, #tpu.memory_space<vmem>>, %arg5: memref<8x128xf32, #tpu.memory_space<vmem>>) attributes {dimension_semantics = [#tpu.dimension_semantics<parallel>], iteration_bounds = array<i64: 2>, scalar_prefetch = 0 : i64, scratch_operands = 0 : i64, tpu.core_type = #tpu.core_type<tc>, window_params = [{transform_indices = @transform_0, window_bounds = array<i64: 64, 72>}, {pipeline_mode = #tpu.pipeline_mode<synchronous>, transform_indices = @transform_1, window_bounds = array<i64: 72, 128>}, {transform_indices = @transform_2, window_bounds = array<i64: 64, 4>}, {pipeline_mode = #tpu.pipeline_mode<synchronous>, transform_indices = @transform_3, window_bounds = array<i64: 4, 128>}, {transform_indices = @transform_4, window_bounds = array<i64: 8, 128>}]} {
    %c64_i32 = arith.constant 64 : i32
    %0 = arith.muli %arg0, %c64_i32 : i32
    %c128_i32 = arith.constant 128 : i32
    %1 = arith.subi %c128_i32, %0 : i32
    %c64_i32_0 = arith.constant 64 : i32
    %2 = arith.minsi %c64_i32_0, %1 : i32
    %c1_i32 = arith.constant 1 : i32
    %3 = arith.maxsi %2, %c1_i32 : i32
    %4 = arith.sitofp %3 : i32 to f32
    %5 = tpu.iota {dimensions = array<i32: 0>} : vector<64x1xi32>
    %6 = vector.broadcast %0 : i32 to vector<64x1xi32>
    %7 = arith.addi %5, %6 : vector<64x1xi32>
    %c128_i32_1 = arith.constant 128 : i32
    %8 = vector.broadcast %c128_i32_1 : i32 to vector<64x1xi32>
    %9 = arith.cmpi slt, %7, %8 : vector<64x1xi32>
    %10 = arith.extui %9 : vector<64x1xi1> to vector<64x1xi32>
    %11 = arith.sitofp %10 : vector<64x1xi32> to vector<64x1xf32>
    %c0 = arith.constant 0 : index
    %c0_2 = arith.constant 0 : index
    %12 = vector.load %arg1[%c0, %c0_2] : memref<64x72xbf16, #tpu.memory_space<vmem>>, vector<64x72xbf16>
    %c0_3 = arith.constant 0 : index
    %c0_4 = arith.constant 0 : index
    %13 = vector.load %arg2[%c0_3, %c0_4] : memref<72x128xbf16, #tpu.memory_space<vmem>>, vector<72x128xbf16>
    %cst = arith.constant dense<0.000000e+00> : vector<64x128xf32>
    %14 = tpu.matmul %12, %13, %cst {dimension_numbers = #tpu.dot_dimension_numbers<[1], [0], [0], [1], [0, 0, 1, 1], [], []>} : vector<64x72xbf16>, vector<72x128xbf16>, vector<64x128xf32> -> vector<64x128xf32>
    %cst_5 = arith.constant dense<0.000000e+00> : vector<128xf32>
    %15 = vector.multi_reduction <add>, %14, %cst_5 [0] : vector<64x128xf32> to vector<128xf32>
    %16 = vector.shape_cast %15 : vector<128xf32> to vector<1x128xf32>
    %17 = vector.broadcast %4 : f32 to vector<1x128xf32>
    %18 = arith.divf %16, %17 : vector<1x128xf32>
    %19 = vector.broadcast %18 : vector<1x128xf32> to vector<64x128xf32>
    %20 = arith.subf %14, %19 : vector<64x128xf32>
    %21 = vector.broadcast %11 : vector<64x1xf32> to vector<64x128xf32>
    %22 = arith.mulf %20, %21 : vector<64x128xf32>
    %23 = arith.mulf %22, %22 : vector<64x128xf32>
    %cst_6 = arith.constant dense<0.000000e+00> : vector<128xf32>
    %24 = vector.multi_reduction <add>, %23, %cst_6 [0] : vector<64x128xf32> to vector<128xf32>
    %25 = vector.shape_cast %24 : vector<128xf32> to vector<1x128xf32>
    %c0_7 = arith.constant 0 : index
    %c0_8 = arith.constant 0 : index
    %26 = vector.load %arg3[%c0_7, %c0_8] : memref<64x4xbf16, #tpu.memory_space<vmem>>, vector<64x4xbf16>
    %c0_9 = arith.constant 0 : index
    %c0_10 = arith.constant 0 : index
    %27 = vector.load %arg4[%c0_9, %c0_10] : memref<4x128xbf16, #tpu.memory_space<vmem>>, vector<4x128xbf16>
    %cst_11 = arith.constant dense<0.000000e+00> : vector<64x128xf32>
    %28 = tpu.matmul %26, %27, %cst_11 {dimension_numbers = #tpu.dot_dimension_numbers<[1], [0], [0], [1], [0, 0, 1, 1], [], []>} : vector<64x4xbf16>, vector<4x128xbf16>, vector<64x128xf32> -> vector<64x128xf32>
    %cst_12 = arith.constant dense<0.000000e+00> : vector<128xf32>
    %29 = vector.multi_reduction <add>, %28, %cst_12 [0] : vector<64x128xf32> to vector<128xf32>
    %30 = vector.shape_cast %29 : vector<128xf32> to vector<1x128xf32>
    %31 = vector.broadcast %4 : f32 to vector<1x128xf32>
    %32 = arith.divf %30, %31 : vector<1x128xf32>
    %33 = vector.broadcast %32 : vector<1x128xf32> to vector<64x128xf32>
    %34 = arith.subf %28, %33 : vector<64x128xf32>
    %35 = vector.broadcast %11 : vector<64x1xf32> to vector<64x128xf32>
    %36 = arith.mulf %34, %35 : vector<64x128xf32>
    %37 = arith.mulf %36, %36 : vector<64x128xf32>
    %cst_13 = arith.constant dense<0.000000e+00> : vector<128xf32>
    %38 = vector.multi_reduction <add>, %37, %cst_13 [0] : vector<64x128xf32> to vector<128xf32>
    %39 = vector.shape_cast %38 : vector<128xf32> to vector<1x128xf32>
    %cst_14 = arith.constant 0.000000e+00 : f32
    %40 = vector.broadcast %cst_14 : f32 to vector<4x128xf32>
    %41 = tpu.concatenate %16, %25, %30, %39, %40 in 0 : vector<1x128xf32>, vector<1x128xf32>, vector<1x128xf32>, vector<1x128xf32>, vector<4x128xf32> -> vector<8x128xf32>
    %c0_15 = arith.constant 0 : index
    %c0_16 = arith.constant 0 : index
    %42 = vector.load %arg5[%c0_15, %c0_16] : memref<8x128xf32, #tpu.memory_space<vmem>>, vector<8x128xf32>
    tpu.vector_store %arg5[%c0_15, %c0_16], %41 {strides = array<i32>} : memref<8x128xf32, #tpu.memory_space<vmem>>, vector<8x128xf32>,
    return
  }
  func.func @transform_0(%arg0: i32) -> (i32, i32) {
    %c0_i32 = arith.constant 0 : i32
    %c0_i32_0 = arith.constant 0 : i32
    return %arg0, %c0_i32 : i32, i32
  }
  func.func @transform_1(%arg0: i32) -> (i32, i32) {
    %c0_i32 = arith.constant 0 : i32
    %c0_i32_0 = arith.constant 0 : i32
    %c0_i32_1 = arith.constant 0 : i32
    return %c0_i32, %c0_i32_0 : i32, i32
  }
  func.func @transform_2(%arg0: i32) -> (i32, i32) {
    %c0_i32 = arith.constant 0 : i32
    %c0_i32_0 = arith.constant 0 : i32
    return %arg0, %c0_i32 : i32, i32
  }
  func.func @transform_3(%arg0: i32) -> (i32, i32) {
    %c0_i32 = arith.constant 0 : i32
    %c0_i32_0 = arith.constant 0 : i32
    %c0_i32_1 = arith.constant 0 : i32
    return %c0_i32, %c0_i32_0 : i32, i32
  }
  func.func @transform_4(%arg0: i32) -> (i32, i32) {
    %c0_i32 = arith.constant 0 : i32
    %c0_i32_0 = arith.constant 0 : i32
    return %arg0, %c0_i32 : i32, i32
  }
}

module attributes {stable_mosaic.version = 11 : i64} {
  func.func @_conv_bn_apply_kernel(%arg0: i32, %arg1: memref<64x72xbf16, #tpu.memory_space<vmem>>, %arg2: memref<72x128xbf16, #tpu.memory_space<vmem>>, %arg3: memref<1x128xf32, #tpu.memory_space<vmem>>, %arg4: memref<1x128xf32, #tpu.memory_space<vmem>>, %arg5: memref<64x4xbf16, #tpu.memory_space<vmem>>, %arg6: memref<4x128xbf16, #tpu.memory_space<vmem>>, %arg7: memref<1x128xf32, #tpu.memory_space<vmem>>, %arg8: memref<1x128xf32, #tpu.memory_space<vmem>>, %arg9: memref<64x8xf32, #tpu.memory_space<vmem>>, %arg10: memref<64x8xf32, #tpu.memory_space<vmem>>) attributes {dimension_semantics = [#tpu.dimension_semantics<parallel>], iteration_bounds = array<i64: 2>, scalar_prefetch = 0 : i64, scratch_operands = 0 : i64, tpu.core_type = #tpu.core_type<tc>, window_params = [{transform_indices = @transform_0, window_bounds = array<i64: 64, 72>}, {pipeline_mode = #tpu.pipeline_mode<synchronous>, transform_indices = @transform_1, window_bounds = array<i64: 72, 128>}, {pipeline_mode = #tpu.pipeline_mode<synchronous>, transform_indices = @transform_2, window_bounds = array<i64: 1, 128>}, {pipeline_mode = #tpu.pipeline_mode<synchronous>, transform_indices = @transform_3, window_bounds = array<i64: 1, 128>}, {transform_indices = @transform_4, window_bounds = array<i64: 64, 4>}, {pipeline_mode = #tpu.pipeline_mode<synchronous>, transform_indices = @transform_5, window_bounds = array<i64: 4, 128>}, {pipeline_mode = #tpu.pipeline_mode<synchronous>, transform_indices = @transform_6, window_bounds = array<i64: 1, 128>}, {pipeline_mode = #tpu.pipeline_mode<synchronous>, transform_indices = @transform_7, window_bounds = array<i64: 1, 128>}, {transform_indices = @transform_8, window_bounds = array<i64: 64, 8>}, {transform_indices = @transform_9, window_bounds = array<i64: 64, 8>}]} {
    %c0 = arith.constant 0 : index
    %c0_0 = arith.constant 0 : index
    %0 = vector.load %arg1[%c0, %c0_0] : memref<64x72xbf16, #tpu.memory_space<vmem>>, vector<64x72xbf16>
    %c0_1 = arith.constant 0 : index
    %c0_2 = arith.constant 0 : index
    %1 = vector.load %arg2[%c0_1, %c0_2] : memref<72x128xbf16, #tpu.memory_space<vmem>>, vector<72x128xbf16>
    %cst = arith.constant dense<0.000000e+00> : vector<64x128xf32>
    %2 = tpu.matmul %0, %1, %cst {dimension_numbers = #tpu.dot_dimension_numbers<[1], [0], [0], [1], [0, 0, 1, 1], [], []>} : vector<64x72xbf16>, vector<72x128xbf16>, vector<64x128xf32> -> vector<64x128xf32>
    %c0_3 = arith.constant 0 : index
    %c0_4 = arith.constant 0 : index
    %3 = vector.load %arg3[%c0_3, %c0_4] : memref<1x128xf32, #tpu.memory_space<vmem>>, vector<1x128xf32>
    %4 = vector.broadcast %3 : vector<1x128xf32> to vector<64x128xf32>
    %5 = arith.mulf %2, %4 : vector<64x128xf32>
    %c0_5 = arith.constant 0 : index
    %c0_6 = arith.constant 0 : index
    %6 = vector.load %arg4[%c0_5, %c0_6] : memref<1x128xf32, #tpu.memory_space<vmem>>, vector<1x128xf32>
    %7 = vector.broadcast %6 : vector<1x128xf32> to vector<64x128xf32>
    %8 = arith.addf %5, %7 : vector<64x128xf32>
    %9 = vector.extract_strided_slice %8 {offsets = [0, 0], sizes = [64, 8], strides = [1, 1]} : vector<64x128xf32> to vector<64x8xf32>
    %c0_7 = arith.constant 0 : index
    %c0_8 = arith.constant 0 : index
    %10 = vector.load %arg9[%c0_7, %c0_8] : memref<64x8xf32, #tpu.memory_space<vmem>>, vector<64x8xf32>
    tpu.vector_store %arg9[%c0_7, %c0_8], %9 {strides = array<i32>} : memref<64x8xf32, #tpu.memory_space<vmem>>, vector<64x8xf32>,
    %11 = vector.extract_strided_slice %8 {offsets = [0, 0], sizes = [64, 8], strides = [1, 1]} : vector<64x128xf32> to vector<64x8xf32>
    %c0_9 = arith.constant 0 : index
    %c0_10 = arith.constant 0 : index
    %12 = vector.load %arg5[%c0_9, %c0_10] : memref<64x4xbf16, #tpu.memory_space<vmem>>, vector<64x4xbf16>
    %c0_11 = arith.constant 0 : index
    %c0_12 = arith.constant 0 : index
    %13 = vector.load %arg6[%c0_11, %c0_12] : memref<4x128xbf16, #tpu.memory_space<vmem>>, vector<4x128xbf16>
    %cst_13 = arith.constant dense<0.000000e+00> : vector<64x128xf32>
    %14 = tpu.matmul %12, %13, %cst_13 {dimension_numbers = #tpu.dot_dimension_numbers<[1], [0], [0], [1], [0, 0, 1, 1], [], []>} : vector<64x4xbf16>, vector<4x128xbf16>, vector<64x128xf32> -> vector<64x128xf32>
    %c0_14 = arith.constant 0 : index
    %c0_15 = arith.constant 0 : index
    %15 = vector.load %arg7[%c0_14, %c0_15] : memref<1x128xf32, #tpu.memory_space<vmem>>, vector<1x128xf32>
    %16 = vector.broadcast %15 : vector<1x128xf32> to vector<64x128xf32>
    %17 = arith.mulf %14, %16 : vector<64x128xf32>
    %c0_16 = arith.constant 0 : index
    %c0_17 = arith.constant 0 : index
    %18 = vector.load %arg8[%c0_16, %c0_17] : memref<1x128xf32, #tpu.memory_space<vmem>>, vector<1x128xf32>
    %19 = vector.broadcast %18 : vector<1x128xf32> to vector<64x128xf32>
    %20 = arith.addf %17, %19 : vector<64x128xf32>
    %21 = vector.extract_strided_slice %20 {offsets = [0, 0], sizes = [64, 8], strides = [1, 1]} : vector<64x128xf32> to vector<64x8xf32>
    %22 = arith.addf %11, %21 : vector<64x8xf32>
    %cst_18 = arith.constant 0.000000e+00 : f32
    %23 = vector.broadcast %cst_18 : f32 to vector<64x8xf32>
    %24 = arith.maximumf %22, %23 : vector<64x8xf32>
    %c0_19 = arith.constant 0 : index
    %c0_20 = arith.constant 0 : index
    %25 = vector.load %arg10[%c0_19, %c0_20] : memref<64x8xf32, #tpu.memory_space<vmem>>, vector<64x8xf32>
    tpu.vector_store %arg10[%c0_19, %c0_20], %24 {strides = array<i32>} : memref<64x8xf32, #tpu.memory_space<vmem>>, vector<64x8xf32>,
    return
  }
  func.func @transform_0(%arg0: i32) -> (i32, i32) {
    %c0_i32 = arith.constant 0 : i32
    %c0_i32_0 = arith.constant 0 : i32
    return %arg0, %c0_i32 : i32, i32
  }
  func.func @transform_1(%arg0: i32) -> (i32, i32) {
    %c0_i32 = arith.constant 0 : i32
    %c0_i32_0 = arith.constant 0 : i32
    %c0_i32_1 = arith.constant 0 : i32
    return %c0_i32, %c0_i32_0 : i32, i32
  }
  func.func @transform_2(%arg0: i32) -> (i32, i32) {
    %c0_i32 = arith.constant 0 : i32
    %c0_i32_0 = arith.constant 0 : i32
    %c0_i32_1 = arith.constant 0 : i32
    return %c0_i32, %c0_i32_0 : i32, i32
  }
  func.func @transform_3(%arg0: i32) -> (i32, i32) {
    %c0_i32 = arith.constant 0 : i32
    %c0_i32_0 = arith.constant 0 : i32
    %c0_i32_1 = arith.constant 0 : i32
    return %c0_i32, %c0_i32_0 : i32, i32
  }
  func.func @transform_4(%arg0: i32) -> (i32, i32) {
    %c0_i32 = arith.constant 0 : i32
    %c0_i32_0 = arith.constant 0 : i32
    return %arg0, %c0_i32 : i32, i32
  }
  func.func @transform_5(%arg0: i32) -> (i32, i32) {
    %c0_i32 = arith.constant 0 : i32
    %c0_i32_0 = arith.constant 0 : i32
    %c0_i32_1 = arith.constant 0 : i32
    return %c0_i32, %c0_i32_0 : i32, i32
  }
  func.func @transform_6(%arg0: i32) -> (i32, i32) {
    %c0_i32 = arith.constant 0 : i32
    %c0_i32_0 = arith.constant 0 : i32
    %c0_i32_1 = arith.constant 0 : i32
    return %c0_i32, %c0_i32_0 : i32, i32
  }
  func.func @transform_7(%arg0: i32) -> (i32, i32) {
    %c0_i32 = arith.constant 0 : i32
    %c0_i32_0 = arith.constant 0 : i32
    %c0_i32_1 = arith.constant 0 : i32
    return %c0_i32, %c0_i32_0 : i32, i32
  }
  func.func @transform_8(%arg0: i32) -> (i32, i32) {
    %c0_i32 = arith.constant 0 : i32
    %c0_i32_0 = arith.constant 0 : i32
    return %arg0, %c0_i32 : i32, i32
  }
  func.func @transform_9(%arg0: i32) -> (i32, i32) {
    %c0_i32 = arith.constant 0 : i32
    %c0_i32_0 = arith.constant 0 : i32
    return %arg0, %c0_i32 : i32, i32
  }
}

module attributes {stable_mosaic.version = 11 : i64} {
  func.func @_conv_stats_kernel(%arg0: i32, %arg1: memref<64x72xbf16, #tpu.memory_space<vmem>>, %arg2: memref<72x128xbf16, #tpu.memory_space<vmem>>, %arg3: memref<8x128xf32, #tpu.memory_space<vmem>>) attributes {dimension_semantics = [#tpu.dimension_semantics<parallel>], iteration_bounds = array<i64: 2>, scalar_prefetch = 0 : i64, scratch_operands = 0 : i64, tpu.core_type = #tpu.core_type<tc>, window_params = [{transform_indices = @transform_0, window_bounds = array<i64: 64, 72>}, {pipeline_mode = #tpu.pipeline_mode<synchronous>, transform_indices = @transform_1, window_bounds = array<i64: 72, 128>}, {transform_indices = @transform_2, window_bounds = array<i64: 8, 128>}]} {
    %c64_i32 = arith.constant 64 : i32
    %0 = arith.muli %arg0, %c64_i32 : i32
    %c128_i32 = arith.constant 128 : i32
    %1 = arith.subi %c128_i32, %0 : i32
    %c64_i32_0 = arith.constant 64 : i32
    %2 = arith.minsi %c64_i32_0, %1 : i32
    %c1_i32 = arith.constant 1 : i32
    %3 = arith.maxsi %2, %c1_i32 : i32
    %4 = arith.sitofp %3 : i32 to f32
    %5 = tpu.iota {dimensions = array<i32: 0>} : vector<64x1xi32>
    %6 = vector.broadcast %0 : i32 to vector<64x1xi32>
    %7 = arith.addi %5, %6 : vector<64x1xi32>
    %c128_i32_1 = arith.constant 128 : i32
    %8 = vector.broadcast %c128_i32_1 : i32 to vector<64x1xi32>
    %9 = arith.cmpi slt, %7, %8 : vector<64x1xi32>
    %10 = arith.extui %9 : vector<64x1xi1> to vector<64x1xi32>
    %11 = arith.sitofp %10 : vector<64x1xi32> to vector<64x1xf32>
    %c0 = arith.constant 0 : index
    %c0_2 = arith.constant 0 : index
    %12 = vector.load %arg1[%c0, %c0_2] : memref<64x72xbf16, #tpu.memory_space<vmem>>, vector<64x72xbf16>
    %c0_3 = arith.constant 0 : index
    %c0_4 = arith.constant 0 : index
    %13 = vector.load %arg2[%c0_3, %c0_4] : memref<72x128xbf16, #tpu.memory_space<vmem>>, vector<72x128xbf16>
    %cst = arith.constant dense<0.000000e+00> : vector<64x128xf32>
    %14 = tpu.matmul %12, %13, %cst {dimension_numbers = #tpu.dot_dimension_numbers<[1], [0], [0], [1], [0, 0, 1, 1], [], []>} : vector<64x72xbf16>, vector<72x128xbf16>, vector<64x128xf32> -> vector<64x128xf32>
    %cst_5 = arith.constant dense<0.000000e+00> : vector<128xf32>
    %15 = vector.multi_reduction <add>, %14, %cst_5 [0] : vector<64x128xf32> to vector<128xf32>
    %16 = vector.shape_cast %15 : vector<128xf32> to vector<1x128xf32>
    %17 = vector.broadcast %4 : f32 to vector<1x128xf32>
    %18 = arith.divf %16, %17 : vector<1x128xf32>
    %19 = vector.broadcast %18 : vector<1x128xf32> to vector<64x128xf32>
    %20 = arith.subf %14, %19 : vector<64x128xf32>
    %21 = vector.broadcast %11 : vector<64x1xf32> to vector<64x128xf32>
    %22 = arith.mulf %20, %21 : vector<64x128xf32>
    %23 = arith.mulf %22, %22 : vector<64x128xf32>
    %cst_6 = arith.constant dense<0.000000e+00> : vector<128xf32>
    %24 = vector.multi_reduction <add>, %23, %cst_6 [0] : vector<64x128xf32> to vector<128xf32>
    %25 = vector.shape_cast %24 : vector<128xf32> to vector<1x128xf32>
    %cst_7 = arith.constant 0.000000e+00 : f32
    %26 = vector.broadcast %cst_7 : f32 to vector<6x128xf32>
    %27 = tpu.concatenate %16, %25, %26 in 0 : vector<1x128xf32>, vector<1x128xf32>, vector<6x128xf32> -> vector<8x128xf32>
    %c0_8 = arith.constant 0 : index
    %c0_9 = arith.constant 0 : index
    %28 = vector.load %arg3[%c0_8, %c0_9] : memref<8x128xf32, #tpu.memory_space<vmem>>, vector<8x128xf32>
    tpu.vector_store %arg3[%c0_8, %c0_9], %27 {strides = array<i32>} : memref<8x128xf32, #tpu.memory_space<vmem>>, vector<8x128xf32>,
    return
  }
  func.func @transform_0(%arg0: i32) -> (i32, i32) {
    %c0_i32 = arith.constant 0 : i32
    %c0_i32_0 = arith.constant 0 : i32
    return %arg0, %c0_i32 : i32, i32
  }
  func.func @transform_1(%arg0: i32) -> (i32, i32) {
    %c0_i32 = arith.constant 0 : i32
    %c0_i32_0 = arith.constant 0 : i32
    %c0_i32_1 = arith.constant 0 : i32
    return %c0_i32, %c0_i32_0 : i32, i32
  }
  func.func @transform_2(%arg0: i32) -> (i32, i32) {
    %c0_i32 = arith.constant 0 : i32
    %c0_i32_0 = arith.constant 0 : i32
    return %arg0, %c0_i32 : i32, i32
  }
}

module attributes {stable_mosaic.version = 11 : i64} {
  func.func @_conv_bn_apply_kernel(%arg0: i32, %arg1: memref<64x72xbf16, #tpu.memory_space<vmem>>, %arg2: memref<72x128xbf16, #tpu.memory_space<vmem>>, %arg3: memref<1x128xf32, #tpu.memory_space<vmem>>, %arg4: memref<1x128xf32, #tpu.memory_space<vmem>>, %arg5: memref<64x8xf32, #tpu.memory_space<vmem>>, %arg6: memref<64x8xf32, #tpu.memory_space<vmem>>, %arg7: memref<64x8xf32, #tpu.memory_space<vmem>>) attributes {dimension_semantics = [#tpu.dimension_semantics<parallel>], iteration_bounds = array<i64: 2>, scalar_prefetch = 0 : i64, scratch_operands = 0 : i64, tpu.core_type = #tpu.core_type<tc>, window_params = [{transform_indices = @transform_0, window_bounds = array<i64: 64, 72>}, {pipeline_mode = #tpu.pipeline_mode<synchronous>, transform_indices = @transform_1, window_bounds = array<i64: 72, 128>}, {pipeline_mode = #tpu.pipeline_mode<synchronous>, transform_indices = @transform_2, window_bounds = array<i64: 1, 128>}, {pipeline_mode = #tpu.pipeline_mode<synchronous>, transform_indices = @transform_3, window_bounds = array<i64: 1, 128>}, {transform_indices = @transform_4, window_bounds = array<i64: 64, 8>}, {transform_indices = @transform_5, window_bounds = array<i64: 64, 8>}, {transform_indices = @transform_6, window_bounds = array<i64: 64, 8>}]} {
    %c0 = arith.constant 0 : index
    %c0_0 = arith.constant 0 : index
    %0 = vector.load %arg1[%c0, %c0_0] : memref<64x72xbf16, #tpu.memory_space<vmem>>, vector<64x72xbf16>
    %c0_1 = arith.constant 0 : index
    %c0_2 = arith.constant 0 : index
    %1 = vector.load %arg2[%c0_1, %c0_2] : memref<72x128xbf16, #tpu.memory_space<vmem>>, vector<72x128xbf16>
    %cst = arith.constant dense<0.000000e+00> : vector<64x128xf32>
    %2 = tpu.matmul %0, %1, %cst {dimension_numbers = #tpu.dot_dimension_numbers<[1], [0], [0], [1], [0, 0, 1, 1], [], []>} : vector<64x72xbf16>, vector<72x128xbf16>, vector<64x128xf32> -> vector<64x128xf32>
    %c0_3 = arith.constant 0 : index
    %c0_4 = arith.constant 0 : index
    %3 = vector.load %arg3[%c0_3, %c0_4] : memref<1x128xf32, #tpu.memory_space<vmem>>, vector<1x128xf32>
    %4 = vector.broadcast %3 : vector<1x128xf32> to vector<64x128xf32>
    %5 = arith.mulf %2, %4 : vector<64x128xf32>
    %c0_5 = arith.constant 0 : index
    %c0_6 = arith.constant 0 : index
    %6 = vector.load %arg4[%c0_5, %c0_6] : memref<1x128xf32, #tpu.memory_space<vmem>>, vector<1x128xf32>
    %7 = vector.broadcast %6 : vector<1x128xf32> to vector<64x128xf32>
    %8 = arith.addf %5, %7 : vector<64x128xf32>
    %9 = vector.extract_strided_slice %8 {offsets = [0, 0], sizes = [64, 8], strides = [1, 1]} : vector<64x128xf32> to vector<64x8xf32>
    %c0_7 = arith.constant 0 : index
    %c0_8 = arith.constant 0 : index
    %10 = vector.load %arg6[%c0_7, %c0_8] : memref<64x8xf32, #tpu.memory_space<vmem>>, vector<64x8xf32>
    tpu.vector_store %arg6[%c0_7, %c0_8], %9 {strides = array<i32>} : memref<64x8xf32, #tpu.memory_space<vmem>>, vector<64x8xf32>,
    %11 = vector.extract_strided_slice %8 {offsets = [0, 0], sizes = [64, 8], strides = [1, 1]} : vector<64x128xf32> to vector<64x8xf32>
    %c0_9 = arith.constant 0 : index
    %c0_10 = arith.constant 0 : index
    %12 = vector.load %arg5[%c0_9, %c0_10] : memref<64x8xf32, #tpu.memory_space<vmem>>, vector<64x8xf32>
    %13 = arith.addf %11, %12 : vector<64x8xf32>
    %cst_11 = arith.constant 0.000000e+00 : f32
    %14 = vector.broadcast %cst_11 : f32 to vector<64x8xf32>
    %15 = arith.maximumf %13, %14 : vector<64x8xf32>
    %c0_12 = arith.constant 0 : index
    %c0_13 = arith.constant 0 : index
    %16 = vector.load %arg7[%c0_12, %c0_13] : memref<64x8xf32, #tpu.memory_space<vmem>>, vector<64x8xf32>
    tpu.vector_store %arg7[%c0_12, %c0_13], %15 {strides = array<i32>} : memref<64x8xf32, #tpu.memory_space<vmem>>, vector<64x8xf32>,
    return
  }
  func.func @transform_0(%arg0: i32) -> (i32, i32) {
    %c0_i32 = arith.constant 0 : i32
    %c0_i32_0 = arith.constant 0 : i32
    return %arg0, %c0_i32 : i32, i32
  }
  func.func @transform_1(%arg0: i32) -> (i32, i32) {
    %c0_i32 = arith.constant 0 : i32
    %c0_i32_0 = arith.constant 0 : i32
    %c0_i32_1 = arith.constant 0 : i32
    return %c0_i32, %c0_i32_0 : i32, i32
  }
  func.func @transform_2(%arg0: i32) -> (i32, i32) {
    %c0_i32 = arith.constant 0 : i32
    %c0_i32_0 = arith.constant 0 : i32
    %c0_i32_1 = arith.constant 0 : i32
    return %c0_i32, %c0_i32_0 : i32, i32
  }
  func.func @transform_3(%arg0: i32) -> (i32, i32) {
    %c0_i32 = arith.constant 0 : i32
    %c0_i32_0 = arith.constant 0 : i32
    %c0_i32_1 = arith.constant 0 : i32
    return %c0_i32, %c0_i32_0 : i32, i32
  }
  func.func @transform_4(%arg0: i32) -> (i32, i32) {
    %c0_i32 = arith.constant 0 : i32
    %c0_i32_0 = arith.constant 0 : i32
    return %arg0, %c0_i32 : i32, i32
  }
  func.func @transform_5(%arg0: i32) -> (i32, i32) {
    %c0_i32 = arith.constant 0 : i32
    %c0_i32_0 = arith.constant 0 : i32
    return %arg0, %c0_i32 : i32, i32
  }
  func.func @transform_6(%arg0: i32) -> (i32, i32) {
    %c0_i32 = arith.constant 0 : i32
    %c0_i32_0 = arith.constant 0 : i32
    return %arg0, %c0_i32 : i32, i32
  }
}

module attributes {stable_mosaic.version = 11 : i64} {
  func.func @_conv_bn_apply_kernel(%arg0: i32, %arg1: memref<64x72xbf16, #tpu.memory_space<vmem>>, %arg2: memref<72x128xbf16, #tpu.memory_space<vmem>>, %arg3: memref<1x128xf32, #tpu.memory_space<vmem>>, %arg4: memref<1x128xf32, #tpu.memory_space<vmem>>, %arg5: memref<64x8xf32, #tpu.memory_space<vmem>>, %arg6: memref<64x8xbf16, #tpu.memory_space<vmem>>) attributes {dimension_semantics = [#tpu.dimension_semantics<parallel>], iteration_bounds = array<i64: 2>, scalar_prefetch = 0 : i64, scratch_operands = 0 : i64, tpu.core_type = #tpu.core_type<tc>, window_params = [{transform_indices = @transform_0, window_bounds = array<i64: 64, 72>}, {pipeline_mode = #tpu.pipeline_mode<synchronous>, transform_indices = @transform_1, window_bounds = array<i64: 72, 128>}, {pipeline_mode = #tpu.pipeline_mode<synchronous>, transform_indices = @transform_2, window_bounds = array<i64: 1, 128>}, {pipeline_mode = #tpu.pipeline_mode<synchronous>, transform_indices = @transform_3, window_bounds = array<i64: 1, 128>}, {transform_indices = @transform_4, window_bounds = array<i64: 64, 8>}, {transform_indices = @transform_5, window_bounds = array<i64: 64, 8>}]} {
    %c0 = arith.constant 0 : index
    %c0_0 = arith.constant 0 : index
    %0 = vector.load %arg1[%c0, %c0_0] : memref<64x72xbf16, #tpu.memory_space<vmem>>, vector<64x72xbf16>
    %c0_1 = arith.constant 0 : index
    %c0_2 = arith.constant 0 : index
    %1 = vector.load %arg2[%c0_1, %c0_2] : memref<72x128xbf16, #tpu.memory_space<vmem>>, vector<72x128xbf16>
    %cst = arith.constant dense<0.000000e+00> : vector<64x128xf32>
    %2 = tpu.matmul %0, %1, %cst {dimension_numbers = #tpu.dot_dimension_numbers<[1], [0], [0], [1], [0, 0, 1, 1], [], []>} : vector<64x72xbf16>, vector<72x128xbf16>, vector<64x128xf32> -> vector<64x128xf32>
    %c0_3 = arith.constant 0 : index
    %c0_4 = arith.constant 0 : index
    %3 = vector.load %arg3[%c0_3, %c0_4] : memref<1x128xf32, #tpu.memory_space<vmem>>, vector<1x128xf32>
    %4 = vector.broadcast %3 : vector<1x128xf32> to vector<64x128xf32>
    %5 = arith.mulf %2, %4 : vector<64x128xf32>
    %c0_5 = arith.constant 0 : index
    %c0_6 = arith.constant 0 : index
    %6 = vector.load %arg4[%c0_5, %c0_6] : memref<1x128xf32, #tpu.memory_space<vmem>>, vector<1x128xf32>
    %7 = vector.broadcast %6 : vector<1x128xf32> to vector<64x128xf32>
    %8 = arith.addf %5, %7 : vector<64x128xf32>
    %9 = vector.extract_strided_slice %8 {offsets = [0, 0], sizes = [64, 8], strides = [1, 1]} : vector<64x128xf32> to vector<64x8xf32>
    %c0_7 = arith.constant 0 : index
    %c0_8 = arith.constant 0 : index
    %10 = vector.load %arg5[%c0_7, %c0_8] : memref<64x8xf32, #tpu.memory_space<vmem>>, vector<64x8xf32>
    tpu.vector_store %arg5[%c0_7, %c0_8], %9 {strides = array<i32>} : memref<64x8xf32, #tpu.memory_space<vmem>>, vector<64x8xf32>,
    %11 = vector.extract_strided_slice %8 {offsets = [0, 0], sizes = [64, 8], strides = [1, 1]} : vector<64x128xf32> to vector<64x8xf32>
    %cst_9 = arith.constant 0.000000e+00 : f32
    %12 = vector.broadcast %cst_9 : f32 to vector<64x8xf32>
    %13 = arith.maximumf %11, %12 : vector<64x8xf32>
    %14 = arith.truncf %13 : vector<64x8xf32> to vector<64x8xbf16>
    %c0_10 = arith.constant 0 : index
    %c0_11 = arith.constant 0 : index
    %15 = vector.load %arg6[%c0_10, %c0_11] : memref<64x8xbf16, #tpu.memory_space<vmem>>, vector<64x8xbf16>
    tpu.vector_store %arg6[%c0_10, %c0_11], %14 {strides = array<i32>} : memref<64x8xbf16, #tpu.memory_space<vmem>>, vector<64x8xbf16>,
    return
  }
  func.func @transform_0(%arg0: i32) -> (i32, i32) {
    %c0_i32 = arith.constant 0 : i32
    %c0_i32_0 = arith.constant 0 : i32
    return %arg0, %c0_i32 : i32, i32
  }
  func.func @transform_1(%arg0: i32) -> (i32, i32) {
    %c0_i32 = arith.constant 0 : i32
    %c0_i32_0 = arith.constant 0 : i32
    %c0_i32_1 = arith.constant 0 : i32
    return %c0_i32, %c0_i32_0 : i32, i32
  }
  func.func @transform_2(%arg0: i32) -> (i32, i32) {
    %c0_i32 = arith.constant 0 : i32
    %c0_i32_0 = arith.constant 0 : i32
    %c0_i32_1 = arith.constant 0 : i32
    return %c0_i32, %c0_i32_0 : i32, i32
  }
  func.func @transform_3(%arg0: i32) -> (i32, i32) {
    %c0_i32 = arith.constant 0 : i32
    %c0_i32_0 = arith.constant 0 : i32
    %c0_i32_1 = arith.constant 0 : i32
    return %c0_i32, %c0_i32_0 : i32, i32
  }
  func.func @transform_4(%arg0: i32) -> (i32, i32) {
    %c0_i32 = arith.constant 0 : i32
    %c0_i32_0 = arith.constant 0 : i32
    return %arg0, %c0_i32 : i32, i32
  }
  func.func @transform_5(%arg0: i32) -> (i32, i32) {
    %c0_i32 = arith.constant 0 : i32
    %c0_i32_0 = arith.constant 0 : i32
    return %arg0, %c0_i32 : i32, i32
  }
}

</mosaic_0001>

<bundles_post_ra>
// kernel: _lambda_.9
= control target key start
LH: loop header
LB: loop body
LE: loop exit
PB: predicated region body
PF: predicated region fallthrough
CT: control target
= control target key end

     0   :  { %s675_s18 = smov 0   ;;  %s754_s0 = inlined_call_operand.vmem [shape: bf16[128,36], index: 0, kind: input, shape index: {}]   ;;  %s755_s1 = inlined_call_operand.vmem [shape: bf16[36,128], index: 1, kind: input, shape index: {}]   ;;  %s756_s2 = inlined_call_operand.vmem [shape: f32[1,128], index: 2, kind: input, shape index: {}]   ;;  %s757_s3 = inlined_call_operand.vmem [shape: f32[1,128], index: 3, kind: input, shape index: {}]   ;;  %s758_s4 = inlined_call_operand.vmem [shape: f32[128,8], index: 4, kind: output, shape index: {0}]   ;;  %s759_s5 = inlined_call_operand.vmem [shape: bf16[128,8], index: 5, kind: output, shape index: {1}]  }
   0x1 LB: > { %s551_s19 = sadd.s32 4294967295, %s643_s18   ;;  %p555_p0 = scmp.ge.s32.totalorder %s643_s18, 1  ;;  %s643_s18 = sphi %s675_s18, %s16_s18  }
   0x2   : > { %p191_p1 = scmp.lt.s32.totalorder %s643_s18, 3 }
   0x4   : > { %p192_p2 = pnand %p555_p0, %p191_p1 }
   0x5   : > { %s556_s24 = sshll.u32 (!%p192_p2), %s551_s19, 3 }
   0x6   : > { %195 = sbr.rel (%p192_p2) target bundleno = 233 (0xe9), region = 36  ;;  %p225_p3 = scmp.lt.s32.totalorder (!%p192_p2), %s556_s24, 15 }
   0xb   : > { %v630_v0 = vld [vmem:[%s755_s1 + $0x10] ss:$0 sps:$4 sm:$0x33]   ;;  %vm304_vm0 = vcmask 1041408   ;;  %v631_v1 = vld [vmem:[%s755_s1 + $0x8] sm:$0xff]   ;;  %v632_v3 = vld [vmem:[%s755_s1] sm:$0xff]  }
   0xc   : > { %620 = vmatprep.subr.msk.bf16.mxu0 %vm304_vm0, %v630_v0  ;;  %621 = vmatprep.subr.msk.bf16.mxu1 %vm304_vm0, %v630_v0  ;;  %v306_v2 = vsel %vm304_vm0, %v630_v0, 0  ;;  %s761_s24 = smov (!%p225_p3, %s556_s24), 15  ;;  %vm291_vm1 = vcmask 293888   ;;  %v573_v8 = vld [vmem:[%s756_s2] ss:$0 sm:$0xff]  ;;  %vm403_vm2 = vcmask 64512  }
   0xd   : > { %601 = vmatpush3.bf16.msra.mxu0 %v306_v2  ;;  %617 = vmatpush3.bf16.msra.mxu1 %v306_v2  ;;  %s557_s27 = sshll.u32 %s761_s24, 2  ;;  %s559_s8 = sshll.u32 %s761_s24, 3  ;;  %v574_v10 = vld [vmem:[%s757_s3] ss:$0 sm:$0xff]  ;;  %vm452_vm3 = vcmask 60416  }
   0xe   : > { %602 = vmatprep.subr.bf16.mxu0 %v631_v1  ;;  %615 = vmatprep.subr.bf16.mxu1 %v631_v1  ;;  %s228_s30 = scalar_lea.vmem %s754_s0, %s557_s27  ;;  %s710_s13 = scalar_lea.vmem %s758_s4, %s559_s8 }
   0xf   : > { %v633_v4 = vld [vmem:[%s228_s30] sm:$0xff]   ;;  %v634_v5 = vld [vmem:[%s228_s30 + $0x10] sm:$0xff]   ;;  %v635_v6 = vld [vmem:[%s228_s30 + $0x8] sm:$0xff]   ;;  %s721_s16 = scalar_lea.vmem %s759_s5, %s557_s27 }
  0x10   : > { %606 = vmatprep.mubr.msk.bf16.mxu0 %vm291_vm1, %v633_v4  ;;  %610 = vmatprep.mubr.msk.bf16.mxu1 %vm291_vm1, %v634_v5  ;;  %v636_v7 = vld [vmem:[%s228_s30 + $0x18] sm:$0xff]  }
  0x11   : > { %603 = vmatpush3.bf16.msra.mxu0 %v631_v1  ;;  %618 = vmatpush3.bf16.msra.mxu1 %v631_v1 }
  0x12   : > { %604 = vmatprep.subr.bf16.mxu0 %v632_v3  ;;  %616 = vmatprep.subr.bf16.mxu1 %v632_v3 }
  0x15   : > { %605 = vmatpush3.bf16.msra.mxu0 %v632_v3  ;;  %619 = vmatpush3.bf16.msra.mxu1 %v632_v3 }
  0x18   : > { %607 = vmatmul.mubr.msk.bf16.vlgmr.msra.gmra.mxu0 %vm291_vm1, %v635_v6  ;;  %611 = vmatmul.mubr.msk.bf16.vlgmr.msra.gmra.mxu1 %vm291_vm1, %v636_v7 }
  0xd8   : > { %v608_v9 = vpop.f32.mrf.mxu0  ;;  %v612_v11 = vpop.f32.mrf.mxu1 }
  0xd9   : > { %v382_v12 = vmul.f32 %v608_v9, %v573_v8  ;;  %v386_v13 = vmul.f32 %v612_v11, %v573_v8 }
  0xda   : > { %v342_v14 = vpop.f32.mrf.mxu0  ;;  %v358_v15 = vpop.f32.mrf.mxu1 }
  0xdb   : > { %v397_v16 = vadd.f32 %v574_v10, %v382_v12  ;;  %v401_v17 = vadd.f32 %v574_v10, %v386_v13  ;;  %v380_v18 = vmul.f32 %v573_v8, %v342_v14  ;;  %v384_v19 = vmul.f32 %v573_v8, %v358_v15 }
  0xdc   : > { %v609_v20 = vpop.f32.mrf.mxu0  ;;  %v613_v21 = vpop.f32.mrf.mxu1 }
  0xdd   : > { %406 = vst.msk [vmem:[%s710_s13 + $0x10] sm:$0xff] %vm403_vm2, %v397_v16  ;;  %v414_v22 = vmax.f32 %v397_v16, 0.0  ;;  %410 = vst.msk [vmem:[%s710_s13 + $0x30] sm:$0xff] %vm403_vm2, %v401_v17  ;;  %v418_v23 = vmax.f32 %v401_v17, 0.0  ;;  %v395_v24 = vadd.f32 %v574_v10, %v380_v18  ;;  %v399_v25 = vadd.f32 %v574_v10, %v384_v19 }
  0xde   : > { %v383_v26 = vmul.f32 %v609_v20, %v573_v8  ;;  %v387_v27 = vmul.f32 %v613_v21, %v573_v8  ;;  %v345_v28 = vpop.f32.mrf.mxu0  ;;  %v361_v29 = vpop.f32.mrf.mxu1 }
  0xdf   : > { %v587_v30 = vpack.c.bf16 %v414_v22, %v414_v22  ;;  %v591_v31 = vpack.c.bf16 %v418_v23, %v418_v23  ;;  %404 = vst.msk [vmem:[%s710_s13] sm:$0xff] %vm403_vm2, %v395_v24  ;;  %v412_v32 = vmax.f32 %v395_v24, 0.0  ;;  %408 = vst.msk [vmem:[%s710_s13 + $0x20] sm:$0xff] %vm403_vm2, %v399_v25  ;;  %v416_v33 = vmax.f32 %v399_v25, 0.0 }
  0xe0   : > { %v398_v34 = vadd.f32 %v574_v10, %v383_v26  ;;  %v402_v35 = vadd.f32 %v574_v10, %v387_v27  ;;  %v381_v36 = vmul.f32 %v573_v8, %v345_v28  ;;  %v385_v37 = vmul.f32 %v573_v8, %v361_v29 }
  0xe1   : > { %455 = vst.msk [vmem:[%s721_s16 + $0x8] sm:$0xf] %vm452_vm3, %v587_v30  ;;  %459 = vst.msk [vmem:[%s721_s16 + $0x18] sm:$0xf] %vm452_vm3, %v591_v31  ;;  %v585_v38 = vpack.c.bf16 %v412_v32, %v412_v32  ;;  %v589_v39 = vpack.c.bf16 %v416_v33, %v416_v33 }
  0xe2   : > { %407 = vst.msk [vmem:[%s710_s13 + $0x18] sm:$0xff] %vm403_vm2, %v398_v34  ;;  %v415_v40 = vmax.f32 %v398_v34, 0.0  ;;  %411 = vst.msk [vmem:[%s710_s13 + $0x38] sm:$0xff] %vm403_vm2, %v402_v35  ;;  %v419_v41 = vmax.f32 %v402_v35, 0.0  ;;  %v396_v42 = vadd.f32 %v574_v10, %v381_v36  ;;  %v400_v43 = vadd.f32 %v574_v10, %v385_v37 }
  0xe3   : > { %453 = vst.msk [vmem:[%s721_s16] sm:$0xf] %vm452_vm3, %v585_v38  ;;  %457 = vst.msk [vmem:[%s721_s16 + $0x10] sm:$0xf] %vm452_vm3, %v589_v39 }
  0xe4   : > { %v588_v44 = vpack.c.bf16 %v415_v40, %v415_v40  ;;  %v592_v45 = vpack.c.bf16 %v419_v41, %v419_v41  ;;  %405 = vst.msk [vmem:[%s710_s13 + $0x8] sm:$0xff] %vm403_vm2, %v396_v42  ;;  %v413_v46 = vmax.f32 %v396_v42, 0.0  ;;  %409 = vst.msk [vmem:[%s710_s13 + $0x28] sm:$0xff] %vm403_vm2, %v400_v43  ;;  %v417_v47 = vmax.f32 %v400_v43, 0.0 }
  0xe6   : > { %456 = vst.msk [vmem:[%s721_s16 + $0xc] sm:$0xf] %vm452_vm3, %v588_v44  ;;  %460 = vst.msk [vmem:[%s721_s16 + $0x1c] sm:$0xf] %vm452_vm3, %v592_v45  ;;  %v586_v48 = vpack.c.bf16 %v413_v46, %v413_v46  ;;  %v590_v49 = vpack.c.bf16 %v417_v47, %v417_v47 }
  0xe8   : > { %454 = vst.msk [vmem:[%s721_s16 + $0x4] sm:$0xf] %vm452_vm3, %v586_v48  ;;  %458 = vst.msk [vmem:[%s721_s16 + $0x14] sm:$0xf] %vm452_vm3, %v590_v49 }
  0xe9 PF: > { %s16_s18 = sadd.s32 1, %s643_s18  }
  0xea   : > { %p13_p4 = scmp.ge.s32.totalorder %s16_s18, 4  }
  0xec   :  { %15 = sbr.rel (!%p13_p4) target bundleno = 1 (0x1), region = 78 }

// kernel: _lambda_.8
= control target key start
LH: loop header
LB: loop body
LE: loop exit
PB: predicated region body
PF: predicated region fallthrough
CT: control target
= control target key end

     0   :  { %s542_s9 = smov 0   ;;  %s607_s0 = inlined_call_operand.vmem [shape: bf16[128,36], index: 0, kind: input, shape index: {}]   ;;  %s608_s1 = inlined_call_operand.vmem [shape: bf16[36,128], index: 1, kind: input, shape index: {}]   ;;  %s609_s2 = inlined_call_operand.vmem [shape: f32[16,128], index: 2, kind: output, shape index: {}]  }
   0x1 LB: > { %s548_s10 = sadd.s32 4294967295, %s524_s9   ;;  %p438_p0 = scmp.ge.s32.totalorder %s524_s9, 1  ;;  %s524_s9 = sphi %s542_s9, %s12_s9  }
   0x2   : > { %p113_p1 = scmp.lt.s32.totalorder %s524_s9, 3 }
   0x4   : > { %p114_p2 = pnand %p438_p0, %p113_p1 }
   0x5   : > { %s439_s15 = sshll.u32 (!%p114_p2), %s548_s10, 3  ;;  %s442_s22 = sshll.u32 (!%p114_p2), %s548_s10, 6 }
   0x6   : > { %117 = sbr.rel (%p114_p2) target bundleno = 286 (0x11e), region = 28  ;;  %p135_p3 = scmp.lt.s32.totalorder (!%p114_p2), %s439_s15, 15 }
   0x7   : > { %s146_s23 = ssub.s32 (!%p114_p2), 128, %s442_s22  ;;  %p140_p6 = scmp.lt.s32.totalorder (!%p114_p2), %s548_s10, 1 }
   0x8   : > { %p147_p4 = scmp.lt.s32.totalorder (!%p114_p2), %s146_s23, 64  ;;  %p443_p5 = scmp.gt.s32.totalorder (!%p114_p2), %s146_s23, 1 }
   0xb   : > { %v509_v0 = vld [vmem:[%s608_s1 + $0x10] ss:$0 sps:$4 sm:$0x33]   ;;  %vm255_vm0 = vcmask 1041408   ;;  %v510_v1 = vld [vmem:[%s608_s1 + $0x8] sm:$0xff]   ;;  %v511_v3 = vld [vmem:[%s608_s1] sm:$0xff]   ;;  %v152_v21 = vlaneseq  ;;  %v161_v30 = vstv %s442_s22 }
   0xc   : > { %498 = vmatprep.subr.msk.bf16.mxu0 %vm255_vm0, %v509_v0  ;;  %v257_v2 = vsel %vm255_vm0, %v509_v0, 0  ;;  %499 = vmatprep.subr.msk.bf16.mxu1 %vm255_vm0, %v509_v0  ;;  %s611_s15 = smov (!%p135_p3, %s439_s15), 15  ;;  %vm242_vm1 = vcmask 293888   ;;  %s613_s23 = smov (!%p147_p4, %s146_s23), 64  ;;  %v526_v49 = vmov 0.0   ;;  %vm377_vm10 = vcmask 1040384  }
   0xd   : > { %479 = vmatpush3.bf16.msra.mxu0 %v257_v2  ;;  %495 = vmatpush3.bf16.msra.mxu1 %v257_v2  ;;  %s440_s18 = sshll.u32 %s611_s15, 2  ;;  %s615_s23 = smov (!%p443_p5, %s613_s23), 1  ;;  %v153_v24 = vshrl.u32 %v152_v21, 7 }
   0xe   : > { %480 = vmatprep.subr.bf16.mxu0 %v510_v1  ;;  %493 = vmatprep.subr.bf16.mxu1 %v510_v1  ;;  %s138_s21 = scalar_lea.vmem %s607_s0, %s440_s18  ;;  %s151_s24 = scvt.s32.f32 %s615_s23 }
   0xf   : > { %v512_v4 = vld [vmem:[%s138_s21] sm:$0xff]   ;;  %v513_v5 = vld [vmem:[%s138_s21 + $0x8] sm:$0xff]   ;;  %v514_v6 = vld [vmem:[%s138_s21 + $0x10] sm:$0xff]   ;;  %v154_v27 = vadd.s32 8, %v153_v24  ;;  %v155_v28 = vadd.s32 16, %v153_v24  ;;  %v156_v31 = vadd.s32 24, %v153_v24  ;;  %v162_v34 = vadd.s32 %v161_v30, %v153_v24 }
  0x10   : > { %484 = vmatprep.mubr.msk.bf16.mxu0 %vm242_vm1, %v512_v4  ;;  %v515_v7 = vld [vmem:[%s138_s21 + $0x18] sm:$0xff]   ;;  %488 = vmatprep.mubr.msk.bf16.mxu1 %vm242_vm1, %v514_v6  ;;  %v337_v20 = vstv %s151_s24  ;;  %v157_v33 = vadd.s32 32, %v153_v24  ;;  %v158_v38 = vadd.s32 40, %v153_v24  ;;  %v159_v39 = vadd.s32 48, %v153_v24  ;;  %s617_s10 = smov (!%p140_p6, %s548_s10), 1 }
  0x11   : > { %481 = vmatpush3.bf16.msra.mxu0 %v510_v1  ;;  %496 = vmatpush3.bf16.msra.mxu1 %v510_v1  ;;  %516 = vrcp.f32 %v337_v20  ;;  %v163_v35 = vadd.s32 %v161_v30, %v154_v27  ;;  %v164_v36 = vadd.s32 %v161_v30, %v155_v28  ;;  %v165_v40 = vadd.s32 %v161_v30, %v156_v31  ;;  %s441_s25 = sshll.u32 %s617_s10, 3 }
  0x12   : > { %482 = vmatprep.subr.bf16.mxu0 %v511_v3  ;;  %494 = vmatprep.subr.bf16.mxu1 %v511_v3  ;;  %v166_v43 = vadd.s32 %v161_v30, %v157_v33  ;;  %vm170_vm2 = vcmp.lt.s32.totalorder %v162_v34, 128  ;;  %v160_v45 = vadd.s32 56, %v153_v24  ;;  %v167_v46 = vadd.s32 %v161_v30, %v158_v38  ;;  %s143_s28 = scalar_lea.vmem %s609_s2, %s441_s25 }
  0x13   : > { %vm171_vm3 = vcmp.lt.s32.totalorder %v163_v35, 128  ;;  %vm172_vm4 = vcmp.lt.s32.totalorder %v164_v36, 128  ;;  %v168_v47 = vadd.s32 %v161_v30, %v159_v39  ;;  %vm173_vm5 = vcmp.lt.s32.totalorder %v165_v40, 128 }
  0x14   : > { %vm174_vm6 = vcmp.lt.s32.totalorder %v166_v43, 128  ;;  %v448_v50 = vsel %vm170_vm2, 1.0, %v526_v49  ;;  %v449_v51 = vsel %vm171_vm3, 1.0, %v526_v49  ;;  %v450_v52 = vsel %vm172_vm4, 1.0, %v526_v49 }
  0x15   : > { %483 = vmatpush3.bf16.msra.mxu0 %v511_v3  ;;  %497 = vmatpush3.bf16.msra.mxu1 %v511_v3  ;;  %v169_v57 = vadd.s32 %v161_v30, %v160_v45  ;;  %vm175_vm7 = vcmp.lt.s32.totalorder %v167_v46, 128  ;;  %v451_v58 = vsel %vm173_vm5, 1.0, %v526_v49  ;;  %vm176_vm8 = vcmp.lt.s32.totalorder %v168_v47, 128 }
  0x16   : > { %v452_v63 = vsel %vm174_vm6, 1.0, %v526_v49  ;;  %v453_v4 = vsel %vm175_vm7, 1.0, %v526_v49 }
  0x17   : > { %vm177_vm9 = vcmp.lt.s32.totalorder %v169_v57, 128 }
  0x18   : > { %485 = vmatmul.mubr.msk.bf16.vlgmr.msra.gmra.mxu0 %vm242_vm1, %v513_v5  ;;  %489 = vmatmul.mubr.msk.bf16.vlgmr.msra.gmra.mxu1 %vm242_vm1, %v515_v7 }
  0x1e   : > { %v517_v42 = vpop.eup %516 }
  0xd8   : > { %v569_v8 = vpop.f32.mrf.mxu0  ;;  %v571_v10 = vpop.f32.mrf.mxu1 }
  0xda   : > { %v293_v9 = vpop.f32.mrf.mxu0  ;;  %v575_v12 = vpop.f32.mrf.mxu1 }
  0xdc   : > { %v573_v11 = vpop.f32.mrf.mxu0  ;;  %v578_v16 = vpop.f32.mrf.mxu1 }
  0xde   : > { %v296_v13 = vpop.f32.mrf.mxu0  ;;  %v582_v19 = vpop.f32.mrf.mxu1 }
  0xdf   : > { %v324_v14 = vadd.f32 %v296_v13, %v293_v9 }
  0xe1   : > { %v325_v15 = vadd.f32 %v569_v8, %v324_v14 }
  0xe3   : > { %v326_v17 = vadd.f32 %v573_v11, %v325_v15  ;;  %v455_v15 = vsel %vm177_vm9, 1.0, %v526_v49 }
  0xe5   : > { %v327_v18 = vadd.f32 %v326_v17, %v575_v12 }
  0xe7   : > { %v328_v22 = vadd.f32 %v327_v18, %v582_v19 }
  0xe9   : > { %v329_v23 = vadd.f32 %v571_v10, %v328_v22 }
  0xeb   : > { %v330_v25 = vadd.f32 %v578_v16, %v329_v23 }
  0xed   : > { %v331_v26 = vrot.slane %v330_v25, 4 }
  0xef   : > { %v332_v29 = vadd.f32 %v331_v26, %v330_v25 }
  0xf1   : > { %v333_v32 = vrot.slane %v332_v29, 2 }
  0xf3   : > { %v334_v37 = vadd.f32 %v333_v32, %v332_v29 }
  0xf5   : > { %v335_v41 = vrot.slane %v334_v37, 1 }
  0xf7   : > { %v587_v44 = vadd.f32 %v335_v41, %v334_v37 }
  0xf9   : > { %v339_v48 = vmul.f32 %v517_v42, %v587_v44 }
  0xfb   : > { %v340_v53 = vsub.f32 %v293_v9, %v339_v48  ;;  %v341_v54 = vsub.f32 %v296_v13, %v339_v48  ;;  %v342_v55 = vsub.f32 %v569_v8, %v339_v48  ;;  %v343_v56 = vsub.f32 %v573_v11, %v339_v48 }
  0xfc   : > { %v344_v59 = vsub.f32 %v575_v12, %v339_v48  ;;  %v345_v0 = vsub.f32 %v582_v19, %v339_v48  ;;  %v346_v5 = vsub.f32 %v571_v10, %v339_v48  ;;  %v454_v9 = vsel %vm176_vm8, 1.0, %v526_v49 }
  0xfd   : > { %v348_v60 = vmul.f32 %v448_v50, %v340_v53  ;;  %v349_v61 = vmul.f32 %v449_v51, %v341_v54  ;;  %v350_v62 = vmul.f32 %v450_v52, %v342_v55  ;;  %v351_v1 = vmul.f32 %v451_v58, %v343_v56 }
  0xfe   : > { %v352_v6 = vmul.f32 %v452_v63, %v344_v59  ;;  %v347_v11 = vsub.f32 %v578_v16, %v339_v48  ;;  %v353_v12 = vmul.f32 %v453_v4, %v345_v0  ;;  %v354_v17 = vmul.f32 %v454_v9, %v346_v5 }
  0xff   : > { %v356_v2 = vmul.f32 %v348_v60, %v348_v60  ;;  %v357_v3 = vmul.f32 %v349_v61, %v349_v61  ;;  %v358_v7 = vmul.f32 %v350_v62, %v350_v62  ;;  %v359_v13 = vmul.f32 %v351_v1, %v351_v1 }
 0x100   : > { %v360_v18 = vmul.f32 %v352_v6, %v352_v6  ;;  %v355_v20 = vmul.f32 %v455_v15, %v347_v11  ;;  %v361_v21 = vmul.f32 %v353_v12, %v353_v12  ;;  %v362_v23 = vmul.f32 %v354_v17, %v354_v17 }
 0x101   : > { %v364_v8 = vadd.f32 %v357_v3, %v356_v2 }
 0x102   : > { %v363_v24 = vmul.f32 %v355_v20, %v355_v20 }
 0x103   : > { %v365_v14 = vadd.f32 %v364_v8, %v358_v7 }
 0x105   : > { %v366_v19 = vadd.f32 %v365_v14, %v359_v13 }
 0x107   : > { %v367_v22 = vadd.f32 %v366_v19, %v360_v18 }
 0x109   : > { %v368_v10 = vadd.f32 %v367_v22, %v361_v21 }
 0x10b   : > { %v369_v25 = vadd.f32 %v368_v10, %v362_v23 }
 0x10d   : > { %v370_v26 = vadd.f32 %v369_v25, %v363_v24 }
 0x10f   : > { %v371_v27 = vrot.slane %v370_v26, 4 }
 0x111   : > { %v372_v16 = vadd.f32 %v371_v27, %v370_v26 }
 0x113   : > { %v373_v28 = vrot.slane %v372_v16, 2 }
 0x115   : > { %v374_v29 = vadd.f32 %v373_v28, %v372_v16 }
 0x117   : > { %v375_v30 = vrot.slane %v374_v29, 1 }
 0x119   : > { %v376_v31 = vadd.f32 %v375_v30, %v374_v29 }
 0x11b   : > { %v378_v32 = vsel %vm377_vm10, %v587_v44, %v376_v31 }
 0x11c   : > { %v379_v33 = vsel %vm255_vm0, %v378_v32, 0.0 }
 0x11d   : > { %380 = vst [vmem:[%s143_s28] sm:$0xff] %v379_v33 }
 0x11e PF: > { %s12_s9 = sadd.s32 1, %s524_s9  }
 0x11f   : > { %p9_p7 = scmp.ge.s32.totalorder %s12_s9, 4  }
 0x121   :  { %11 = sbr.rel (!%p9_p7) target bundleno = 1 (0x1), region = 58 }

// kernel: _lambda_.10
= control target key start
LH: loop header
LB: loop body
LE: loop exit
PB: predicated region body
PF: predicated region fallthrough
CT: control target
= control target key end

     0   :  { %s854_s15 = smov 0   ;;  %s981_s0 = inlined_call_operand.vmem [shape: bf16[128,72], index: 0, kind: input, shape index: {}]   ;;  %s982_s1 = inlined_call_operand.vmem [shape: bf16[72,128], index: 1, kind: input, shape index: {}]   ;;  %s983_s2 = inlined_call_operand.vmem [shape: bf16[128,4], index: 2, kind: input, shape index: {}]   ;;  %s984_s3 = inlined_call_operand.vmem [shape: bf16[4,128], index: 3, kind: input, shape index: {}]   ;;  %s985_s4 = inlined_call_operand.vmem [shape: f32[16,128], index: 4, kind: output, shape index: {}]  }
   0x1 LB: > { %s860_s16 = sadd.s32 4294967295, %s826_s15   ;;  %p707_p0 = scmp.ge.s32.totalorder %s826_s15, 1  ;;  %s826_s15 = sphi %s854_s15, %s14_s15  }
   0x2   : > { %p174_p1 = scmp.lt.s32.totalorder %s826_s15, 3 }
   0x4   : > { %p175_p2 = pnand %p707_p0, %p174_p1 }
   0x5   : > { %s708_s23 = sshll.u32 (!%p175_p2), %s860_s16, 3  ;;  %s713_s11 = sshll.u32 (!%p175_p2), %s860_s16, 6 }
   0x6   : > { %178 = sbr.rel (%p175_p2) target bundleno = 296 (0x128), region = 36  ;;  %p205_p3 = scmp.lt.s32.totalorder (!%p175_p2), %s708_s23, 15 }
   0x7   : > { %s222_s12 = ssub.s32 (!%p175_p2), 128, %s713_s11  ;;  %p216_p6 = scmp.lt.s32.totalorder (!%p175_p2), %s860_s16, 1 }
   0x8   : > { %p223_p4 = scmp.lt.s32.totalorder (!%p175_p2), %s222_s12, 64  ;;  %p714_p5 = scmp.gt.s32.totalorder (!%p175_p2), %s222_s12, 1 }
   0xb   : > { %v805_v0 = vld [vmem:[%s982_s1 + $0x20] ss:$0 sps:$4 sm:$0xff]   ;;  %vm347_vm0 = vcmask 1043456   ;;  %v806_v1 = vld [vmem:[%s982_s1 + $0x18] sm:$0xff]   ;;  %vm511_vm1 = vcmask 1041408   ;;  %v808_v5 = vld [vmem:[%s982_s1 + $0x10] sm:$0xff]   ;;  %v228_v32 = vlaneseq  ;;  %v237_v44 = vstv %s713_s11 }
   0xc   : > { %v477_v2 = vld [vmem:[%s984_s3] sm:$0x3]  ;;  %794 = vmatprep.subr.msk.bf16.mxu0 %vm347_vm0, %v805_v0  ;;  %v349_v3 = vsel %vm347_vm0, %v805_v0, 0  ;;  %s987_s23 = smov (!%p205_p3, %s708_s23), 15  ;;  %vm498_vm2 = vcmask 31744   ;;  %v810_v6 = vld [vmem:[%s982_s1 + $0x8] sm:$0xff]  }
   0xd   : > { %767 = vmatpush3.bf16.msra.mxu0 %v349_v3  ;;  %795 = vmatprep.subr.msk.bf16.mxu1 %vm511_vm1, %v477_v2  ;;  %v513_v4 = vsel %vm511_vm1, %v477_v2, 0  ;;  %s709_s26 = sshll.u32 %s987_s23, 2  ;;  %v812_v10 = vld [vmem:[%s982_s1] sm:$0xff]   ;;  %vm334_vm3 = vcmask 588800   ;;  %v229_v38 = vshrl.u32 %v228_v32, 7  ;;  %s991_s16 = smov (!%p216_p6, %s860_s16), 1 }
   0xe   : > { %768 = vmatprep.subr.bf16.mxu0 %v806_v1  ;;  %785 = vmatpush3.bf16.msra.mxu1 %v513_v4  ;;  %s214_s29 = scalar_lea.vmem %s983_s2, %s709_s26  ;;  %s208_s8 = scalar_lea.vmem %s981_s0, %s709_s26  ;;  %vm631_vm12 = vcmask 1040384   ;;  %vm634_vm13 = vcmask 1042432  }
   0xf   : > { %v807_v7 = vld [vmem:[%s214_s29] sm:$0xff]   ;;  %v809_v8 = vld [vmem:[%s214_s29 + $0x8] sm:$0xff]   ;;  %v811_v9 = vld [vmem:[%s214_s29 + $0x10] sm:$0xff]   ;;  %s224_s13 = scalar_select %p223_p4, %s222_s12, 64  ;;  %v230_v46 = vadd.s32 8, %v229_v38  ;;  %v231_v47 = vadd.s32 16, %v229_v38  ;;  %v238_v55 = vadd.s32 %v237_v44, %v229_v38 }
  0x10   : > { %786 = vmatprep.mubr.msk.bf16.mxu1 %vm498_vm2, %v807_v7  ;;  %v814_v11 = vld [vmem:[%s208_s8] sm:$0xff]   ;;  %v813_v12 = vld [vmem:[%s214_s29 + $0x18] sm:$0xff]   ;;  %v815_v13 = vld [vmem:[%s208_s8 + $0x8] sm:$0xff]   ;;  %v232_v51 = vadd.s32 24, %v229_v38  ;;  %v233_v54 = vadd.s32 32, %v229_v38  ;;  %v234_v60 = vadd.s32 40, %v229_v38 }
  0x11   : > { %769 = vmatpush3.bf16.msra.mxu0 %v806_v1  ;;  %787 = vmatmul.mubr.msk.bf16.vlgmr.msra.gmra.mxu1 %vm498_vm2, %v809_v8  ;;  %v816_v14 = vld [vmem:[%s208_s8 + $0x10] sm:$0xff]   ;;  %v817_v15 = vld [vmem:[%s208_s8 + $0x18] sm:$0xff]   ;;  %s989_s13 = smov (!%p714_p5, %s224_s13), 1  ;;  %v239_v56 = vadd.s32 %v237_v44, %v230_v46  ;;  %v240_v57 = vadd.s32 %v237_v44, %v231_v47  ;;  %vm246_vm4 = vcmp.lt.s32.totalorder %v238_v55, 128  ;;  %v235_v4 = vadd.s32 48, %v229_v38  ;;  %s712_s17 = sshll.u32 %s991_s16, 3 }
  0x12   : > { %770 = vmatprep.subr.bf16.mxu0 %v808_v5  ;;  %790 = vmatprep.mubr.msk.bf16.mxu1 %vm498_vm2, %v811_v9  ;;  %s227_s14 = scvt.s32.f32 %s989_s13  ;;  %v241_v61 = vadd.s32 %v237_v44, %v232_v51  ;;  %v242_v1 = vadd.s32 %v237_v44, %v233_v54  ;;  %v828_v7 = vmov 0.0   ;;  %v236_v32 = vadd.s32 56, %v229_v38  ;;  %s219_s20 = scalar_lea.vmem %s985_s4, %s712_s17 }
  0x13   : > { %776 = vmatprep.mubr.msk.bf16.mxu0 %vm334_vm3, %v814_v11  ;;  %vm247_vm5 = vcmp.lt.s32.totalorder %v239_v56, 128  ;;  %vm248_vm6 = vcmp.lt.s32.totalorder %v240_v57, 128  ;;  %v719_v8 = vsel %vm246_vm4, 1.0, %v828_v7 }
  0x14   : > { %v429_v29 = vstv %s227_s14  ;;  %vm249_vm7 = vcmp.lt.s32.totalorder %v241_v61, 128  ;;  %vm250_vm8 = vcmp.lt.s32.totalorder %v242_v1, 128  ;;  %v720_v9 = vsel %vm247_vm5, 1.0, %v828_v7 }
  0x15   : > { %771 = vmatpush3.bf16.msra.mxu0 %v808_v5  ;;  %818 = vrcp.f32 %v429_v29  ;;  %v243_v5 = vadd.s32 %v237_v44, %v234_v60 }
  0x16   : > { %772 = vmatprep.subr.bf16.mxu0 %v810_v6 }
  0x17   : > { %vm251_vm9 = vcmp.lt.s32.totalorder %v243_v5, 128 }
  0x18   : > { %v724_v46 = vsel %vm251_vm9, 1.0, %v828_v7 }
  0x19   : > { %773 = vmatpush3.bf16.msra.mxu0 %v810_v6  ;;  %791 = vmatmul.mubr.msk.bf16.gmra.mxu1 %vm498_vm2, %v813_v12 }
  0x1a   : > { %774 = vmatprep.subr.bf16.mxu0 %v812_v10 }
  0x1d   : > { %775 = vmatpush3.bf16.msra.mxu0 %v812_v10  ;;  %v721_v10 = vsel %vm248_vm6, 1.0, %v828_v7 }
  0x20   : > { %777 = vmatmul.mubr.msk.bf16.vlgmr.msra.gmra.mxu0 %vm334_vm3, %v815_v13 }
  0x21   : > { %780 = vmatprep.mubr.msk.bf16.mxu0 %vm334_vm3, %v816_v14 }
  0x22   : > { %v819_v0 = vpop.eup %818 }
  0x28   : > { %781 = vmatmul.mubr.msk.bf16.gmra.mxu0 %vm334_vm3, %v817_v15  ;;  %v722_v15 = vsel %vm249_vm7, 1.0, %v828_v7 }
  0xd1   : > { %v900_v16 = vpop.f32.mrf.mxu1 }
  0xd3   : > { %v902_v17 = vpop.f32.mrf.mxu1 }
  0xd5   : > { %v904_v18 = vpop.f32.mrf.mxu1 }
  0xd7   : > { %v906_v19 = vpop.f32.mrf.mxu1 }
  0xd8   : > { %v580_v20 = vadd.f32 %v906_v19, %v902_v17 }
  0xd9   : > { %v910_v21 = vpop.f32.mrf.mxu1 }
  0xda   : > { %v581_v22 = vadd.f32 %v900_v16, %v580_v20 }
  0xdb   : > { %v913_v23 = vpop.f32.mrf.mxu1 }
  0xdc   : > { %v582_v25 = vadd.f32 %v904_v18, %v581_v22 }
  0xdd   : > { %v918_v26 = vpop.f32.mrf.mxu1 }
  0xde   : > { %v583_v28 = vadd.f32 %v582_v25, %v913_v23 }
  0xdf   : > { %v923_v30 = vpop.f32.mrf.mxu1 }
  0xe0   : > { %v915_v24 = vpop.f32.mrf.mxu0  ;;  %v584_v33 = vadd.f32 %v583_v28, %v923_v30 }
  0xe2   : > { %v920_v27 = vpop.f32.mrf.mxu0  ;;  %v585_v35 = vadd.f32 %v910_v21, %v584_v33  ;;  %v244_v33 = vadd.s32 %v237_v44, %v235_v4 }
  0xe4   : > { %v925_v31 = vpop.f32.mrf.mxu0  ;;  %v586_v39 = vadd.f32 %v918_v26, %v585_v35  ;;  %v723_v35 = vsel %vm250_vm8, 1.0, %v828_v7  ;;  %vm252_vm10 = vcmp.lt.s32.totalorder %v244_v33, 128 }
  0xe5   : > { %v725_v54 = vsel %vm252_vm10, 1.0, %v828_v7 }
  0xe6   : > { %v928_v34 = vpop.f32.mrf.mxu0  ;;  %v587_v42 = vrot.slane %v586_v39, 4 }
  0xe7   : > { %v416_v36 = vadd.f32 %v928_v34, %v920_v27 }
  0xe8   : > { %v933_v37 = vpop.f32.mrf.mxu0  ;;  %v588_v48 = vadd.f32 %v587_v42, %v586_v39 }
  0xe9   : > { %v417_v40 = vadd.f32 %v915_v24, %v416_v36 }
  0xea   : > { %v937_v41 = vpop.f32.mrf.mxu0  ;;  %v589_v52 = vrot.slane %v588_v48, 2 }
  0xeb   : > { %v418_v43 = vadd.f32 %v925_v31, %v417_v40 }
  0xec   : > { %v942_v45 = vpop.f32.mrf.mxu0  ;;  %v590_v58 = vadd.f32 %v589_v52, %v588_v48 }
  0xed   : > { %v419_v49 = vadd.f32 %v418_v43, %v937_v41  ;;  %v245_v43 = vadd.s32 %v237_v44, %v236_v32 }
  0xee   : > { %v945_v50 = vpop.f32.mrf.mxu0  ;;  %v591_v62 = vrot.slane %v590_v58, 1 }
  0xef   : > { %v420_v53 = vadd.f32 %v419_v49, %v945_v50  ;;  %vm253_vm11 = vcmp.lt.s32.totalorder %v245_v43, 128 }
  0xf0   : > { %v950_v2 = vadd.f32 %v591_v62, %v590_v58 }
  0xf1   : > { %v421_v59 = vadd.f32 %v933_v37, %v420_v53 }
  0xf2   : > { %v593_v6 = vmul.f32 %v819_v0, %v950_v2 }
  0xf3   : > { %v422_v63 = vadd.f32 %v942_v45, %v421_v59  ;;  %v726_v59 = vsel %vm253_vm11, 1.0, %v828_v7 }
  0xf4   : > { %v594_v11 = vsub.f32 %v902_v17, %v593_v6  ;;  %v595_v12 = vsub.f32 %v906_v19, %v593_v6  ;;  %v596_v13 = vsub.f32 %v900_v16, %v593_v6  ;;  %v597_v14 = vsub.f32 %v904_v18, %v593_v6 }
  0xf5   : > { %v423_v3 = vrot.slane %v422_v63, 4  ;;  %v598_v22 = vsub.f32 %v913_v23, %v593_v6  ;;  %v599_v19 = vsub.f32 %v923_v30, %v593_v6  ;;  %v600_v38 = vsub.f32 %v910_v21, %v593_v6 }
  0xf6   : > { %v602_v25 = vmul.f32 %v719_v8, %v594_v11  ;;  %v603_v28 = vmul.f32 %v720_v9, %v595_v12  ;;  %v604_v29 = vmul.f32 %v721_v10, %v596_v13  ;;  %v605_v36 = vmul.f32 %v722_v15, %v597_v14 }
  0xf7   : > { %v424_v20 = vadd.f32 %v423_v3, %v422_v63  ;;  %v606_v16 = vmul.f32 %v723_v35, %v598_v22  ;;  %v607_v49 = vmul.f32 %v724_v46, %v599_v19  ;;  %v601_v56 = vsub.f32 %v918_v26, %v593_v6 }
  0xf8   : > { %v610_v17 = vmul.f32 %v602_v25, %v602_v25  ;;  %v611_v39 = vmul.f32 %v603_v28, %v603_v28  ;;  %v612_v40 = vmul.f32 %v604_v29, %v604_v29  ;;  %v613_v23 = vmul.f32 %v605_v36, %v605_v36 }
  0xf9   : > { %v425_v42 = vrot.slane %v424_v20, 2  ;;  %v614_v51 = vmul.f32 %v606_v16, %v606_v16  ;;  %v608_v57 = vmul.f32 %v725_v54, %v600_v38  ;;  %v615_v58 = vmul.f32 %v607_v49, %v607_v49 }
  0xfa   : > { %v618_v18 = vadd.f32 %v611_v39, %v610_v17  ;;  %v609_v1 = vmul.f32 %v726_v59, %v601_v56 }
  0xfb   : > { %v426_v48 = vadd.f32 %v425_v42, %v424_v20  ;;  %v616_v3 = vmul.f32 %v608_v57, %v608_v57 }
  0xfc   : > { %v619_v47 = vadd.f32 %v618_v18, %v612_v40 }
  0xfd   : > { %v427_v53 = vrot.slane %v426_v48, 1 }
  0xfe   : > { %v620_v52 = vadd.f32 %v619_v47, %v613_v23 }
  0xff   : > { %v428_v30 = vadd.f32 %v427_v53, %v426_v48 }
 0x100   : > { %v621_v55 = vadd.f32 %v620_v52, %v614_v51 }
 0x101   : > { %v431_v44 = vmul.f32 %v819_v0, %v428_v30 }
 0x102   : > { %v622_v60 = vadd.f32 %v621_v55, %v615_v58 }
 0x103   : > { %v432_v61 = vsub.f32 %v920_v27, %v431_v44  ;;  %v433_v62 = vsub.f32 %v928_v34, %v431_v44  ;;  %v434_v21 = vsub.f32 %v915_v24, %v431_v44  ;;  %v435_v63 = vsub.f32 %v925_v31, %v431_v44 }
 0x104   : > { %v436_v11 = vsub.f32 %v937_v41, %v431_v44  ;;  %v623_v6 = vadd.f32 %v622_v60, %v616_v3  ;;  %v437_v0 = vsub.f32 %v945_v50, %v431_v44  ;;  %v617_v27 = vmul.f32 %v609_v1, %v609_v1 }
 0x105   : > { %v440_v4 = vmul.f32 %v719_v8, %v432_v61  ;;  %v441_v5 = vmul.f32 %v720_v9, %v433_v62  ;;  %v442_v26 = vmul.f32 %v721_v10, %v434_v21  ;;  %v443_v7 = vmul.f32 %v722_v15, %v435_v63 }
 0x106   : > { %v438_v34 = vsub.f32 %v933_v37, %v431_v44  ;;  %v444_v14 = vmul.f32 %v723_v35, %v436_v11  ;;  %v624_v31 = vadd.f32 %v623_v6, %v617_v27  ;;  %v439_v22 = vsub.f32 %v942_v45, %v431_v44 }
 0x107   : > { %v448_v12 = vmul.f32 %v440_v4, %v440_v4  ;;  %v449_v13 = vmul.f32 %v441_v5, %v441_v5  ;;  %v450_v24 = vmul.f32 %v442_v26, %v442_v26  ;;  %v445_v8 = vmul.f32 %v724_v46, %v437_v0 }
 0x108   : > { %v451_v9 = vmul.f32 %v443_v7, %v443_v7  ;;  %v446_v41 = vmul.f32 %v725_v54, %v438_v34  ;;  %v452_v10 = vmul.f32 %v444_v14, %v444_v14  ;;  %v625_v29 = vrot.slane %v624_v31, 4 }
 0x109   : > { %v456_v20 = vadd.f32 %v449_v13, %v448_v12  ;;  %v447_v50 = vmul.f32 %v726_v59, %v439_v22  ;;  %v453_v15 = vmul.f32 %v445_v8, %v445_v8 }
 0x10a   : > { %v454_v33 = vmul.f32 %v446_v41, %v446_v41  ;;  %v626_v35 = vadd.f32 %v625_v29, %v624_v31 }
 0x10b   : > { %v457_v25 = vadd.f32 %v456_v20, %v450_v24  ;;  %v455_v36 = vmul.f32 %v447_v50, %v447_v50 }
 0x10c   : > { %v627_v19 = vrot.slane %v626_v35, 2 }
 0x10d   : > { %v458_v28 = vadd.f32 %v457_v25, %v451_v9 }
 0x10e   : > { %v628_v40 = vadd.f32 %v627_v19, %v626_v35 }
 0x10f   : > { %v459_v32 = vadd.f32 %v458_v28, %v452_v10 }
 0x110   : > { %v629_v43 = vrot.slane %v628_v40, 1 }
 0x111   : > { %v460_v37 = vadd.f32 %v459_v32, %v453_v15 }
 0x112   : > { %v630_v47 = vadd.f32 %v629_v43, %v628_v40 }
 0x113   : > { %v461_v17 = vadd.f32 %v460_v37, %v454_v33 }
 0x115   : > { %v462_v39 = vadd.f32 %v461_v17, %v455_v36 }
 0x117   : > { %v463_v45 = vrot.slane %v462_v39, 4 }
 0x119   : > { %v464_v16 = vadd.f32 %v463_v45, %v462_v39 }
 0x11b   : > { %v465_v18 = vrot.slane %v464_v16, 2 }
 0x11d   : > { %v466_v42 = vadd.f32 %v465_v18, %v464_v16 }
 0x11f   : > { %v467_v46 = vrot.slane %v466_v42, 1 }
 0x121   : > { %v468_v23 = vadd.f32 %v467_v46, %v466_v42 }
 0x123   : > { %v632_v48 = vsel %vm631_vm12, %v428_v30, %v468_v23 }
 0x124   : > { %v633_v38 = vsel %vm511_vm1, %v632_v48, %v950_v2 }
 0x125   : > { %v635_v49 = vsel %vm634_vm13, %v633_v38, %v630_v47 }
 0x126   : > { %v636_v51 = vsel %vm347_vm0, %v635_v49, 0.0 }
 0x127   : > { %637 = vst [vmem:[%s219_s20] sm:$0xff] %v636_v51 }
 0x128 PF: > { %s14_s15 = sadd.s32 1, %s826_s15  }
 0x129   : > { %p11_p7 = scmp.ge.s32.totalorder %s14_s15, 4  }
 0x12b   :  { %13 = sbr.rel (!%p11_p7) target bundleno = 1 (0x1), region = 69 }

// kernel: _lambda_.11
= control target key start
LH: loop header
LB: loop body
LE: loop exit
PB: predicated region body
PF: predicated region fallthrough
CT: control target
= control target key end

     0   :  { %s988_s30 = smov 0   ;;  %s1119_s0 = inlined_call_operand.vmem [shape: bf16[128,72], index: 0, kind: input, shape index: {}]   ;;  %s1120_s1 = inlined_call_operand.vmem [shape: bf16[72,128], index: 1, kind: input, shape index: {}]   ;;  %s1121_s2 = inlined_call_operand.vmem [shape: f32[1,128], index: 2, kind: input, shape index: {}]   ;;  %s1122_s3 = inlined_call_operand.vmem [shape: f32[1,128], index: 3, kind: input, shape index: {}]   ;;  %s1123_s4 = inlined_call_operand.vmem [shape: bf16[128,4], index: 4, kind: input, shape index: {}]   ;;  %s1124_s5 = inlined_call_operand.vmem [shape: bf16[4,128], index: 5, kind: input, shape index: {}]   ;;  %s1125_s6 = inlined_call_operand.vmem [shape: f32[1,128], index: 6, kind: input, shape index: {}]   ;;  %s1126_s7 = inlined_call_operand.vmem [shape: f32[1,128], index: 7, kind: input, shape index: {}]   ;;  %s1127_s8 = inlined_call_operand.vmem [shape: f32[128,8], index: 8, kind: output, shape index: {0}]   ;;  %s1128_s9 = inlined_call_operand.vmem [shape: f32[128,8], index: 9, kind: output, shape index: {1}]  }
   0x1 LB: > { %s825_s10 = sadd.s32 4294967295, %s936_s30   ;;  %p829_p0 = scmp.ge.s32.totalorder %s936_s30, 1  ;;  %s936_s30 = sphi %s988_s30, %s20_s30  }
   0x2   : > { %p302_p1 = scmp.lt.s32.totalorder %s936_s30, 3 }
   0x4   : > { %p303_p2 = pnand %p829_p0, %p302_p1 }
   0x5   : > { %s830_s19 = sshll.u32 (!%p303_p2), %s825_s10, 3 }
   0x6   : > { %306 = sbr.rel (%p303_p2) target bundleno = 248 (0xf8), region = 52  ;;  %p349_p3 = scmp.lt.s32.totalorder (!%p303_p2), %s830_s19, 15 }
   0xb   : > { %v917_v0 = vld [vmem:[%s1120_s1 + $0x20] ss:$0 sps:$4 sm:$0xff]   ;;  %vm450_vm0 = vcmask 1043456   ;;  %v918_v1 = vld [vmem:[%s1120_s1 + $0x18] sm:$0xff]   ;;  %vm600_vm1 = vcmask 1041408   ;;  %v919_v4 = vld [vmem:[%s1120_s1 + $0x10] sm:$0xff]  }
   0xc   : > { %907 = vmatprep.subr.msk.bf16.mxu0 %vm450_vm0, %v917_v0  ;;  %v452_v2 = vsel %vm450_vm0, %v917_v0, 0  ;;  %v566_v3 = vld [vmem:[%s1124_s5] sm:$0x3]  ;;  %s1130_s19 = smov (!%p349_p3, %s830_s19), 15  ;;  %v920_v6 = vld [vmem:[%s1120_s1 + $0x8] sm:$0xff]   ;;  %vm587_vm2 = vcmask 31744  }
   0xd   : > { %880 = vmatpush3.bf16.msra.mxu0 %v452_v2  ;;  %908 = vmatprep.subr.msk.bf16.mxu1 %vm600_vm1, %v566_v3  ;;  %v602_v5 = vsel %vm600_vm1, %v566_v3, 0  ;;  %s831_s22 = sshll.u32 %s1130_s19, 2  ;;  %v923_v7 = vld [vmem:[%s1120_s1] sm:$0xff]   ;;  %vm437_vm3 = vcmask 588800   ;;  %s835_s17 = sshll.u32 %s1130_s19, 3  ;;  %vm549_vm4 = vcmask 64512  }
   0xe   : > { %881 = vmatprep.subr.bf16.mxu0 %v918_v1  ;;  %898 = vmatpush3.bf16.msra.mxu1 %v602_v5  ;;  %s358_s25 = scalar_lea.vmem %s1123_s4, %s831_s22  ;;  %s352_s10 = scalar_lea.vmem %s1119_s0, %s831_s22  ;;  %v861_v17 = vld [vmem:[%s1125_s6] ss:$0 sm:$0xff] }
   0xf   : > { %v921_v8 = vld [vmem:[%s358_s25] sm:$0xff]   ;;  %v922_v9 = vld [vmem:[%s358_s25 + $0x8] sm:$0xff]   ;;  %v926_v11 = vld [vmem:[%s358_s25 + $0x10] sm:$0xff]   ;;  %s1055_s23 = scalar_lea.vmem %s1127_s8, %s835_s17 }
  0x10   : > { %899 = vmatprep.mubr.msk.bf16.mxu1 %vm587_vm2, %v921_v8  ;;  %v924_v10 = vld [vmem:[%s352_s10] sm:$0xff]   ;;  %v925_v12 = vld [vmem:[%s352_s10 + $0x8] sm:$0xff]   ;;  %v927_v13 = vld [vmem:[%s358_s25 + $0x18] sm:$0xff]   ;;  %s1067_s25 = scalar_lea.vmem %s1128_s9, %s835_s17 }
  0x11   : > { %882 = vmatpush3.bf16.msra.mxu0 %v918_v1  ;;  %900 = vmatmul.mubr.msk.bf16.vlgmr.msra.gmra.mxu1 %vm587_vm2, %v922_v9  ;;  %v928_v14 = vld [vmem:[%s352_s10 + $0x10] sm:$0xff]   ;;  %v929_v15 = vld [vmem:[%s352_s10 + $0x18] sm:$0xff]   ;;  %v1037_v21 = vld [vmem:[%s1126_s7] ss:$0 sm:$0xff] }
  0x12   : > { %883 = vmatprep.subr.bf16.mxu0 %v919_v4  ;;  %889 = vmatprep.mubr.msk.bf16.mxu0 %vm437_vm3, %v924_v10  ;;  %v1042_v22 = vld [vmem:[%s1121_s2] ss:$0 sm:$0xff] }
  0x13   : > { %903 = vmatprep.mubr.msk.bf16.mxu1 %vm587_vm2, %v926_v11  ;;  %v1048_v25 = vld [vmem:[%s1122_s3] ss:$0 sm:$0xff] }
  0x15   : > { %884 = vmatpush3.bf16.msra.mxu0 %v919_v4 }
  0x16   : > { %885 = vmatprep.subr.bf16.mxu0 %v920_v6 }
  0x19   : > { %886 = vmatpush3.bf16.msra.mxu0 %v920_v6  ;;  %904 = vmatmul.mubr.msk.bf16.gmra.mxu1 %vm587_vm2, %v927_v13 }
  0x1a   : > { %887 = vmatprep.subr.bf16.mxu0 %v923_v7 }
  0x1d   : > { %888 = vmatpush3.bf16.msra.mxu0 %v923_v7 }
  0x20   : > { %890 = vmatmul.mubr.msk.bf16.vlgmr.msra.gmra.mxu0 %vm437_vm3, %v925_v12 }
  0x21   : > { %893 = vmatprep.mubr.msk.bf16.mxu0 %vm437_vm3, %v928_v14 }
  0x28   : > { %894 = vmatmul.mubr.msk.bf16.gmra.mxu0 %vm437_vm3, %v929_v15 }
  0xd1   : > { %v901_v16 = vpop.f32.mrf.mxu1 }
  0xd2   : > { %v678_v20 = vmul.f32 %v901_v16, %v861_v17 }
  0xd3   : > { %v638_v18 = vpop.f32.mrf.mxu1 }
  0xd4   : > { %v693_v27 = vadd.f32 %v1037_v21, %v678_v20  ;;  %v676_v28 = vmul.f32 %v861_v17, %v638_v18 }
  0xd5   : > { %v902_v19 = vpop.f32.mrf.mxu1 }
  0xd6   : > { %v679_v30 = vmul.f32 %v902_v19, %v861_v17  ;;  %v691_v38 = vadd.f32 %v1037_v21, %v676_v28 }
  0xd7   : > { %v641_v23 = vpop.f32.mrf.mxu1 }
  0xd8   : > { %v677_v35 = vmul.f32 %v861_v17, %v641_v23  ;;  %v694_v43 = vadd.f32 %v1037_v21, %v679_v30 }
  0xd9   : > { %v905_v26 = vpop.f32.mrf.mxu1 }
  0xda   : > { %v682_v36 = vmul.f32 %v905_v26, %v861_v17  ;;  %v692_v49 = vadd.f32 %v1037_v21, %v677_v35 }
  0xdb   : > { %v654_v32 = vpop.f32.mrf.mxu1 }
  0xdc   : > { %v697_v50 = vadd.f32 %v1037_v21, %v682_v36  ;;  %v680_v51 = vmul.f32 %v861_v17, %v654_v32 }
  0xdd   : > { %v906_v42 = vpop.f32.mrf.mxu1 }
  0xde   : > { %v683_v58 = vmul.f32 %v906_v42, %v861_v17  ;;  %v695_v0 = vadd.f32 %v1037_v21, %v680_v51 }
  0xdf   : > { %v657_v57 = vpop.f32.mrf.mxu1 }
  0xe0   : > { %v891_v24 = vpop.f32.mrf.mxu0  ;;  %v681_v1 = vmul.f32 %v861_v17, %v657_v57  ;;  %v698_v7 = vadd.f32 %v1037_v21, %v683_v58 }
  0xe1   : > { %v528_v29 = vmul.f32 %v891_v24, %v1042_v22 }
  0xe2   : > { %v488_v31 = vpop.f32.mrf.mxu0  ;;  %v696_v13 = vadd.f32 %v1037_v21, %v681_v1 }
  0xe3   : > { %v543_v33 = vadd.f32 %v1048_v25, %v528_v29  ;;  %v526_v34 = vmul.f32 %v1042_v22, %v488_v31 }
  0xe4   : > { %v892_v37 = vpop.f32.mrf.mxu0 }
  0xe5   : > { %552 = vst.msk [vmem:[%s1055_s23 + $0x10] sm:$0xff] %vm549_vm4, %v543_v33  ;;  %v701_v39 = vadd.f32 %v693_v27, %v543_v33  ;;  %v541_v40 = vadd.f32 %v1048_v25, %v526_v34  ;;  %v529_v41 = vmul.f32 %v892_v37, %v1042_v22 }
  0xe6   : > { %v491_v44 = vpop.f32.mrf.mxu0 }
  0xe7   : > { %v709_v45 = vmax.f32 %v701_v39, 0.0  ;;  %550 = vst.msk [vmem:[%s1055_s23] sm:$0xff] %vm549_vm4, %v541_v40  ;;  %v699_v46 = vadd.f32 %v691_v38, %v541_v40  ;;  %v544_v47 = vadd.f32 %v1048_v25, %v529_v41  ;;  %v527_v48 = vmul.f32 %v1042_v22, %v491_v44 }
  0xe8   : > { %v895_v52 = vpop.f32.mrf.mxu0 }
  0xe9   : > { %717 = vst.msk [vmem:[%s1067_s25 + $0x10] sm:$0xff] %vm549_vm4, %v709_v45  ;;  %v707_v53 = vmax.f32 %v699_v46, 0.0  ;;  %553 = vst.msk [vmem:[%s1055_s23 + $0x18] sm:$0xff] %vm549_vm4, %v544_v47  ;;  %v702_v54 = vadd.f32 %v694_v43, %v544_v47  ;;  %v542_v55 = vadd.f32 %v1048_v25, %v527_v48  ;;  %v532_v56 = vmul.f32 %v895_v52, %v1042_v22 }
  0xea   : > { %v504_v59 = vpop.f32.mrf.mxu0 }
  0xeb   : > { %715 = vst.msk [vmem:[%s1067_s25] sm:$0xff] %vm549_vm4, %v707_v53  ;;  %v710_v60 = vmax.f32 %v702_v54, 0.0  ;;  %551 = vst.msk [vmem:[%s1055_s23 + $0x8] sm:$0xff] %vm549_vm4, %v542_v55  ;;  %v700_v61 = vadd.f32 %v692_v49, %v542_v55  ;;  %v547_v62 = vadd.f32 %v1048_v25, %v532_v56  ;;  %v530_v63 = vmul.f32 %v1042_v22, %v504_v59 }
  0xec   : > { %v896_v2 = vpop.f32.mrf.mxu0 }
  0xed   : > { %718 = vst.msk [vmem:[%s1067_s25 + $0x18] sm:$0xff] %vm549_vm4, %v710_v60  ;;  %v708_v3 = vmax.f32 %v700_v61, 0.0  ;;  %556 = vst.msk [vmem:[%s1055_s23 + $0x30] sm:$0xff] %vm549_vm4, %v547_v62  ;;  %v705_v4 = vadd.f32 %v697_v50, %v547_v62  ;;  %v545_v5 = vadd.f32 %v1048_v25, %v530_v63  ;;  %v533_v6 = vmul.f32 %v896_v2, %v1042_v22 }
  0xee   : > { %v507_v8 = vpop.f32.mrf.mxu0 }
  0xef   : > { %716 = vst.msk [vmem:[%s1067_s25 + $0x8] sm:$0xff] %vm549_vm4, %v708_v3  ;;  %v713_v9 = vmax.f32 %v705_v4, 0.0  ;;  %554 = vst.msk [vmem:[%s1055_s23 + $0x20] sm:$0xff] %vm549_vm4, %v545_v5  ;;  %v703_v10 = vadd.f32 %v695_v0, %v545_v5  ;;  %v548_v11 = vadd.f32 %v1048_v25, %v533_v6  ;;  %v531_v12 = vmul.f32 %v1042_v22, %v507_v8 }
  0xf1   : > { %721 = vst.msk [vmem:[%s1067_s25 + $0x30] sm:$0xff] %vm549_vm4, %v713_v9  ;;  %v711_v14 = vmax.f32 %v703_v10, 0.0  ;;  %557 = vst.msk [vmem:[%s1055_s23 + $0x38] sm:$0xff] %vm549_vm4, %v548_v11  ;;  %v706_v15 = vadd.f32 %v698_v7, %v548_v11  ;;  %v546_v16 = vadd.f32 %v1048_v25, %v531_v12 }
  0xf3   : > { %719 = vst.msk [vmem:[%s1067_s25 + $0x20] sm:$0xff] %vm549_vm4, %v711_v14  ;;  %v714_v17 = vmax.f32 %v706_v15, 0.0  ;;  %555 = vst.msk [vmem:[%s1055_s23 + $0x28] sm:$0xff] %vm549_vm4, %v546_v16  ;;  %v704_v18 = vadd.f32 %v696_v13, %v546_v16 }
  0xf5   : > { %722 = vst.msk [vmem:[%s1067_s25 + $0x38] sm:$0xff] %vm549_vm4, %v714_v17  ;;  %v712_v19 = vmax.f32 %v704_v18, 0.0 }
  0xf7   : > { %720 = vst.msk [vmem:[%s1067_s25 + $0x28] sm:$0xff] %vm549_vm4, %v712_v19 }
  0xf8 PF: > { %s20_s30 = sadd.s32 1, %s936_s30  }
  0xf9   : > { %p17_p4 = scmp.ge.s32.totalorder %s20_s30, 4  }
  0xfb   :  { %19 = sbr.rel (!%p17_p4) target bundleno = 1 (0x1), region = 97 }

// kernel: _lambda_.12
= control target key start
LH: loop header
LB: loop body
LE: loop exit
PB: predicated region body
PF: predicated region fallthrough
CT: control target
= control target key end

     0   :  { %s573_s9 = smov 0   ;;  %s644_s0 = inlined_call_operand.vmem [shape: bf16[128,72], index: 0, kind: input, shape index: {}]   ;;  %s645_s1 = inlined_call_operand.vmem [shape: bf16[72,128], index: 1, kind: input, shape index: {}]   ;;  %s646_s2 = inlined_call_operand.vmem [shape: f32[16,128], index: 2, kind: output, shape index: {}]  }
   0x1 LB: > { %s579_s10 = sadd.s32 4294967295, %s555_s9   ;;  %p455_p0 = scmp.ge.s32.totalorder %s555_s9, 1  ;;  %s555_s9 = sphi %s573_s9, %s12_s9  }
   0x2   : > { %p113_p1 = scmp.lt.s32.totalorder %s555_s9, 3 }
   0x4   : > { %p114_p2 = pnand %p455_p0, %p113_p1 }
   0x5   : > { %s456_s15 = sshll.u32 (!%p114_p2), %s579_s10, 3  ;;  %s459_s26 = sshll.u32 (!%p114_p2), %s579_s10, 6 }
   0x6   : > { %117 = sbr.rel (%p114_p2) target bundleno = 294 (0x126), region = 28  ;;  %p135_p3 = scmp.lt.s32.totalorder (!%p114_p2), %s456_s15, 15 }
   0x7   : > { %s146_s27 = ssub.s32 (!%p114_p2), 128, %s459_s26  ;;  %p140_p6 = scmp.lt.s32.totalorder (!%p114_p2), %s579_s10, 1 }
   0x8   : > { %p147_p4 = scmp.lt.s32.totalorder (!%p114_p2), %s146_s27, 64  ;;  %p460_p5 = scmp.gt.s32.totalorder (!%p114_p2), %s146_s27, 1 }
   0xb   : > { %v538_v0 = vld [vmem:[%s645_s1 + $0x20] ss:$0 sps:$4 sm:$0xff]   ;;  %vm271_vm0 = vcmask 1043456   ;;  %v539_v1 = vld [vmem:[%s645_s1 + $0x18] sm:$0xff]   ;;  %v540_v3 = vld [vmem:[%s645_s1 + $0x10] sm:$0xff]   ;;  %s648_s15 = smov (!%p135_p3, %s456_s15), 15  ;;  %v152_v23 = vlaneseq  ;;  %v161_v32 = vstv %s459_s26 }
   0xc   : > { %527 = vmatprep.subr.msk.bf16.mxu0 %vm271_vm0, %v538_v0  ;;  %v273_v2 = vsel %vm271_vm0, %v538_v0, 0  ;;  %528 = vmatprep.subr.msk.bf16.mxu1 %vm271_vm0, %v538_v0  ;;  %v541_v4 = vld [vmem:[%s645_s1 + $0x8] sm:$0xff]   ;;  %s457_s20 = sshll.u32 %s648_s15, 2  ;;  %vm258_vm1 = vcmask 588800   ;;  %v542_v6 = vld [vmem:[%s645_s1] sm:$0xff]   ;;  %s650_s27 = smov (!%p147_p4, %s146_s27), 64 }
   0xd   : > { %500 = vmatpush3.bf16.msra.mxu0 %v273_v2  ;;  %522 = vmatpush3.bf16.msra.mxu1 %v273_v2  ;;  %s138_s23 = scalar_lea.vmem %s644_s0, %s457_s20  ;;  %s652_s27 = smov (!%p460_p5, %s650_s27), 1  ;;  %v153_v26 = vshrl.u32 %v152_v23, 7  ;;  %v557_v51 = vmov 0.0   ;;  %vm393_vm10 = vcmask 1040384   ;;  %vm395_vm11 = vcmask 1041408  }
   0xe   : > { %501 = vmatprep.subr.bf16.mxu0 %v539_v1  ;;  %518 = vmatprep.subr.bf16.mxu1 %v539_v1  ;;  %v543_v5 = vld [vmem:[%s138_s23] sm:$0xff]   ;;  %v545_v7 = vld [vmem:[%s138_s23 + $0x10] sm:$0xff]   ;;  %v544_v8 = vld [vmem:[%s138_s23 + $0x8] sm:$0xff]   ;;  %s151_s28 = scvt.s32.f32 %s652_s27  ;;  %s654_s10 = smov (!%p140_p6, %s579_s10), 1 }
   0xf   : > { %509 = vmatprep.mubr.msk.bf16.mxu0 %vm258_vm1, %v543_v5  ;;  %513 = vmatprep.mubr.msk.bf16.mxu1 %vm258_vm1, %v545_v7  ;;  %v546_v9 = vld [vmem:[%s138_s23 + $0x18] sm:$0xff]   ;;  %v154_v29 = vadd.s32 8, %v153_v26  ;;  %v155_v30 = vadd.s32 16, %v153_v26  ;;  %v156_v33 = vadd.s32 24, %v153_v26  ;;  %v157_v35 = vadd.s32 32, %v153_v26  ;;  %s458_s29 = sshll.u32 %s654_s10, 3 }
  0x10   : > { %v353_v22 = vstv %s151_s28  ;;  %v162_v36 = vadd.s32 %v161_v32, %v153_v26  ;;  %v158_v40 = vadd.s32 40, %v153_v26  ;;  %v159_v41 = vadd.s32 48, %v153_v26  ;;  %s143_s4 = scalar_lea.vmem %s646_s2, %s458_s29 }
  0x11   : > { %502 = vmatpush3.bf16.msra.mxu0 %v539_v1  ;;  %523 = vmatpush3.bf16.msra.mxu1 %v539_v1  ;;  %547 = vrcp.f32 %v353_v22  ;;  %v163_v37 = vadd.s32 %v161_v32, %v154_v29  ;;  %v164_v38 = vadd.s32 %v161_v32, %v155_v30  ;;  %v165_v42 = vadd.s32 %v161_v32, %v156_v33 }
  0x12   : > { %503 = vmatprep.subr.bf16.mxu0 %v540_v3  ;;  %519 = vmatprep.subr.bf16.mxu1 %v540_v3  ;;  %v166_v45 = vadd.s32 %v161_v32, %v157_v35  ;;  %vm170_vm2 = vcmp.lt.s32.totalorder %v162_v36, 128  ;;  %v160_v47 = vadd.s32 56, %v153_v26  ;;  %v167_v48 = vadd.s32 %v161_v32, %v158_v40 }
  0x13   : > { %vm171_vm3 = vcmp.lt.s32.totalorder %v163_v37, 128  ;;  %vm172_vm4 = vcmp.lt.s32.totalorder %v164_v38, 128  ;;  %v168_v49 = vadd.s32 %v161_v32, %v159_v41  ;;  %vm173_vm5 = vcmp.lt.s32.totalorder %v165_v42, 128 }
  0x14   : > { %vm174_vm6 = vcmp.lt.s32.totalorder %v166_v45, 128  ;;  %v465_v52 = vsel %vm170_vm2, 1.0, %v557_v51  ;;  %v466_v53 = vsel %vm171_vm3, 1.0, %v557_v51  ;;  %v467_v54 = vsel %vm172_vm4, 1.0, %v557_v51 }
  0x15   : > { %504 = vmatpush3.bf16.msra.mxu0 %v540_v3  ;;  %524 = vmatpush3.bf16.msra.mxu1 %v540_v3  ;;  %v169_v59 = vadd.s32 %v161_v32, %v160_v47  ;;  %vm175_vm7 = vcmp.lt.s32.totalorder %v167_v48, 128  ;;  %v468_v60 = vsel %vm173_vm5, 1.0, %v557_v51  ;;  %vm176_vm8 = vcmp.lt.s32.totalorder %v168_v49, 128 }
  0x16   : > { %505 = vmatprep.subr.bf16.mxu0 %v541_v4  ;;  %520 = vmatprep.subr.bf16.mxu1 %v541_v4  ;;  %v469_v1 = vsel %vm174_vm6, 1.0, %v557_v51 }
  0x17   : > { %vm177_vm9 = vcmp.lt.s32.totalorder %v169_v59, 128 }
  0x19   : > { %506 = vmatpush3.bf16.msra.mxu0 %v541_v4  ;;  %525 = vmatpush3.bf16.msra.mxu1 %v541_v4 }
  0x1a   : > { %507 = vmatprep.subr.bf16.mxu0 %v542_v6  ;;  %521 = vmatprep.subr.bf16.mxu1 %v542_v6 }
  0x1d   : > { %508 = vmatpush3.bf16.msra.mxu0 %v542_v6  ;;  %526 = vmatpush3.bf16.msra.mxu1 %v542_v6  ;;  %v470_v6 = vsel %vm175_vm7, 1.0, %v557_v51 }
  0x1e   : > { %v548_v44 = vpop.eup %547 }
  0x20   : > { %510 = vmatmul.mubr.msk.bf16.vlgmr.msra.gmra.mxu0 %vm258_vm1, %v544_v8  ;;  %514 = vmatmul.mubr.msk.bf16.vlgmr.msra.gmra.mxu1 %vm258_vm1, %v546_v9 }
  0xe0   : > { %v607_v10 = vpop.f32.mrf.mxu0  ;;  %v609_v12 = vpop.f32.mrf.mxu1 }
  0xe2   : > { %v309_v11 = vpop.f32.mrf.mxu0  ;;  %v613_v14 = vpop.f32.mrf.mxu1 }
  0xe4   : > { %v611_v13 = vpop.f32.mrf.mxu0  ;;  %v616_v18 = vpop.f32.mrf.mxu1 }
  0xe6   : > { %v312_v15 = vpop.f32.mrf.mxu0  ;;  %v620_v21 = vpop.f32.mrf.mxu1 }
  0xe7   : > { %v340_v16 = vadd.f32 %v312_v15, %v309_v11 }
  0xe9   : > { %v341_v17 = vadd.f32 %v607_v10, %v340_v16 }
  0xeb   : > { %v342_v19 = vadd.f32 %v611_v13, %v341_v17  ;;  %v472_v17 = vsel %vm177_vm9, 1.0, %v557_v51 }
  0xed   : > { %v343_v20 = vadd.f32 %v342_v19, %v613_v14 }
  0xef   : > { %v344_v24 = vadd.f32 %v343_v20, %v620_v21 }
  0xf1   : > { %v345_v25 = vadd.f32 %v609_v12, %v344_v24 }
  0xf3   : > { %v346_v27 = vadd.f32 %v616_v18, %v345_v25 }
  0xf5   : > { %v347_v28 = vrot.slane %v346_v27, 4 }
  0xf7   : > { %v348_v31 = vadd.f32 %v347_v28, %v346_v27 }
  0xf9   : > { %v349_v34 = vrot.slane %v348_v31, 2 }
  0xfb   : > { %v350_v39 = vadd.f32 %v349_v34, %v348_v31 }
  0xfd   : > { %v351_v43 = vrot.slane %v350_v39, 1 }
  0xff   : > { %v625_v46 = vadd.f32 %v351_v43, %v350_v39 }
 0x101   : > { %v355_v50 = vmul.f32 %v548_v44, %v625_v46 }
 0x103   : > { %v356_v55 = vsub.f32 %v309_v11, %v355_v50  ;;  %v357_v56 = vsub.f32 %v312_v15, %v355_v50  ;;  %v358_v57 = vsub.f32 %v607_v10, %v355_v50  ;;  %v359_v58 = vsub.f32 %v611_v13, %v355_v50 }
 0x104   : > { %v360_v61 = vsub.f32 %v613_v14, %v355_v50  ;;  %v361_v2 = vsub.f32 %v620_v21, %v355_v50  ;;  %v362_v7 = vsub.f32 %v609_v12, %v355_v50  ;;  %v471_v11 = vsel %vm176_vm8, 1.0, %v557_v51 }
 0x105   : > { %v364_v62 = vmul.f32 %v465_v52, %v356_v55  ;;  %v365_v63 = vmul.f32 %v466_v53, %v357_v56  ;;  %v366_v0 = vmul.f32 %v467_v54, %v358_v57  ;;  %v367_v3 = vmul.f32 %v468_v60, %v359_v58 }
 0x106   : > { %v368_v8 = vmul.f32 %v469_v1, %v360_v61  ;;  %v363_v13 = vsub.f32 %v616_v18, %v355_v50  ;;  %v369_v14 = vmul.f32 %v470_v6, %v361_v2  ;;  %v370_v19 = vmul.f32 %v471_v11, %v362_v7 }
 0x107   : > { %v372_v4 = vmul.f32 %v364_v62, %v364_v62  ;;  %v373_v5 = vmul.f32 %v365_v63, %v365_v63  ;;  %v374_v9 = vmul.f32 %v366_v0, %v366_v0  ;;  %v375_v15 = vmul.f32 %v367_v3, %v367_v3 }
 0x108   : > { %v376_v20 = vmul.f32 %v368_v8, %v368_v8  ;;  %v371_v22 = vmul.f32 %v472_v17, %v363_v13  ;;  %v377_v23 = vmul.f32 %v369_v14, %v369_v14  ;;  %v378_v25 = vmul.f32 %v370_v19, %v370_v19 }
 0x109   : > { %v380_v10 = vadd.f32 %v373_v5, %v372_v4 }
 0x10a   : > { %v379_v26 = vmul.f32 %v371_v22, %v371_v22 }
 0x10b   : > { %v381_v16 = vadd.f32 %v380_v10, %v374_v9 }
 0x10d   : > { %v382_v21 = vadd.f32 %v381_v16, %v375_v15 }
 0x10f   : > { %v383_v24 = vadd.f32 %v382_v21, %v376_v20 }
 0x111   : > { %v384_v12 = vadd.f32 %v383_v24, %v377_v23 }
 0x113   : > { %v385_v27 = vadd.f32 %v384_v12, %v378_v25 }
 0x115   : > { %v386_v28 = vadd.f32 %v385_v27, %v379_v26 }
 0x117   : > { %v387_v29 = vrot.slane %v386_v28, 4 }
 0x119   : > { %v388_v18 = vadd.f32 %v387_v29, %v386_v28 }
 0x11b   : > { %v389_v30 = vrot.slane %v388_v18, 2 }
 0x11d   : > { %v390_v31 = vadd.f32 %v389_v30, %v388_v18 }
 0x11f   : > { %v391_v32 = vrot.slane %v390_v31, 1 }
 0x121   : > { %v392_v33 = vadd.f32 %v391_v32, %v390_v31 }
 0x123   : > { %v394_v34 = vsel %vm393_vm10, %v625_v46, %v392_v33 }
 0x124   : > { %v396_v35 = vsel %vm395_vm11, %v394_v34, 0.0 }
 0x125   : > { %397 = vst [vmem:[%s143_s4] sm:$0xff] %v396_v35 }
 0x126 PF: > { %s12_s9 = sadd.s32 1, %s555_s9  }
 0x127   : > { %p9_p7 = scmp.ge.s32.totalorder %s12_s9, 4  }
 0x129   :  { %11 = sbr.rel (!%p9_p7) target bundleno = 1 (0x1), region = 58 }

// kernel: _lambda_.13
= control target key start
LH: loop header
LB: loop body
LE: loop exit
PB: predicated region body
PF: predicated region fallthrough
CT: control target
= control target key end

     0   :  { %s705_s18 = smov 0   ;;  %s794_s0 = inlined_call_operand.vmem [shape: bf16[128,72], index: 0, kind: input, shape index: {}]   ;;  %s795_s1 = inlined_call_operand.vmem [shape: bf16[72,128], index: 1, kind: input, shape index: {}]   ;;  %s796_s2 = inlined_call_operand.vmem [shape: f32[1,128], index: 2, kind: input, shape index: {}]   ;;  %s797_s3 = inlined_call_operand.vmem [shape: f32[1,128], index: 3, kind: input, shape index: {}]   ;;  %s798_s4 = inlined_call_operand.vmem [shape: f32[128,8], index: 4, kind: output, shape index: {0}]   ;;  %s799_s5 = inlined_call_operand.vmem [shape: bf16[128,8], index: 5, kind: output, shape index: {1}]  }
   0x1 LB: > { %s567_s19 = sadd.s32 4294967295, %s673_s18   ;;  %p571_p0 = scmp.ge.s32.totalorder %s673_s18, 1  ;;  %s673_s18 = sphi %s705_s18, %s16_s18  }
   0x2   : > { %p191_p1 = scmp.lt.s32.totalorder %s673_s18, 3 }
   0x4   : > { %p192_p2 = pnand %p571_p0, %p191_p1 }
   0x5   : > { %s572_s24 = sshll.u32 (!%p192_p2), %s567_s19, 3 }
   0x6   : > { %195 = sbr.rel (%p192_p2) target bundleno = 241 (0xf1), region = 36  ;;  %p225_p3 = scmp.lt.s32.totalorder (!%p192_p2), %s572_s24, 15 }
   0xb   : > { %v658_v0 = vld [vmem:[%s795_s1 + $0x20] ss:$0 sps:$4 sm:$0xff]   ;;  %vm320_vm0 = vcmask 1043456   ;;  %v659_v1 = vld [vmem:[%s795_s1 + $0x18] sm:$0xff]   ;;  %v660_v3 = vld [vmem:[%s795_s1 + $0x10] sm:$0xff]   ;;  %s801_s24 = smov (!%p225_p3, %s572_s24), 15 }
   0xc   : > { %648 = vmatprep.subr.msk.bf16.mxu0 %vm320_vm0, %v658_v0  ;;  %649 = vmatprep.subr.msk.bf16.mxu1 %vm320_vm0, %v658_v0  ;;  %v322_v2 = vsel %vm320_vm0, %v658_v0, 0  ;;  %v661_v4 = vld [vmem:[%s795_s1 + $0x8] sm:$0xff]   ;;  %s573_s29 = sshll.u32 %s801_s24, 2  ;;  %vm307_vm1 = vcmask 588800   ;;  %v662_v7 = vld [vmem:[%s795_s1] sm:$0xff]   ;;  %s575_s12 = sshll.u32 %s801_s24, 3 }
   0xd   : > { %621 = vmatpush3.bf16.msra.mxu0 %v322_v2  ;;  %643 = vmatpush3.bf16.msra.mxu1 %v322_v2  ;;  %s228_s7 = scalar_lea.vmem %s794_s0, %s573_s29  ;;  %v591_v10 = vld [vmem:[%s796_s2] ss:$0 sm:$0xff]  ;;  %s750_s17 = scalar_lea.vmem %s798_s4, %s575_s12  ;;  %vm419_vm2 = vcmask 64512   ;;  %vm468_vm3 = vcmask 60416  }
   0xe   : > { %622 = vmatprep.subr.bf16.mxu0 %v659_v1  ;;  %639 = vmatprep.subr.bf16.mxu1 %v659_v1  ;;  %v663_v5 = vld [vmem:[%s228_s7] sm:$0xff]   ;;  %v664_v6 = vld [vmem:[%s228_s7 + $0x10] sm:$0xff]   ;;  %v665_v8 = vld [vmem:[%s228_s7 + $0x8] sm:$0xff]   ;;  %s761_s21 = scalar_lea.vmem %s799_s5, %s573_s29 }
   0xf   : > { %630 = vmatprep.mubr.msk.bf16.mxu0 %vm307_vm1, %v663_v5  ;;  %634 = vmatprep.mubr.msk.bf16.mxu1 %vm307_vm1, %v664_v6  ;;  %v666_v9 = vld [vmem:[%s228_s7 + $0x18] sm:$0xff]   ;;  %v592_v12 = vld [vmem:[%s797_s3] ss:$0 sm:$0xff] }
  0x11   : > { %623 = vmatpush3.bf16.msra.mxu0 %v659_v1  ;;  %644 = vmatpush3.bf16.msra.mxu1 %v659_v1 }
  0x12   : > { %624 = vmatprep.subr.bf16.mxu0 %v660_v3  ;;  %640 = vmatprep.subr.bf16.mxu1 %v660_v3 }
  0x15   : > { %625 = vmatpush3.bf16.msra.mxu0 %v660_v3  ;;  %645 = vmatpush3.bf16.msra.mxu1 %v660_v3 }
  0x16   : > { %626 = vmatprep.subr.bf16.mxu0 %v661_v4  ;;  %641 = vmatprep.subr.bf16.mxu1 %v661_v4 }
  0x19   : > { %627 = vmatpush3.bf16.msra.mxu0 %v661_v4  ;;  %646 = vmatpush3.bf16.msra.mxu1 %v661_v4 }
  0x1a   : > { %628 = vmatprep.subr.bf16.mxu0 %v662_v7  ;;  %642 = vmatprep.subr.bf16.mxu1 %v662_v7 }
  0x1d   : > { %629 = vmatpush3.bf16.msra.mxu0 %v662_v7  ;;  %647 = vmatpush3.bf16.msra.mxu1 %v662_v7 }
  0x20   : > { %631 = vmatmul.mubr.msk.bf16.vlgmr.msra.gmra.mxu0 %vm307_vm1, %v665_v8  ;;  %635 = vmatmul.mubr.msk.bf16.vlgmr.msra.gmra.mxu1 %vm307_vm1, %v666_v9 }
  0xe0   : > { %v632_v11 = vpop.f32.mrf.mxu0  ;;  %v636_v13 = vpop.f32.mrf.mxu1 }
  0xe1   : > { %v398_v14 = vmul.f32 %v632_v11, %v591_v10  ;;  %v402_v15 = vmul.f32 %v636_v13, %v591_v10 }
  0xe2   : > { %v358_v16 = vpop.f32.mrf.mxu0  ;;  %v374_v17 = vpop.f32.mrf.mxu1 }
  0xe3   : > { %v413_v18 = vadd.f32 %v592_v12, %v398_v14  ;;  %v417_v19 = vadd.f32 %v592_v12, %v402_v15  ;;  %v396_v20 = vmul.f32 %v591_v10, %v358_v16  ;;  %v400_v21 = vmul.f32 %v591_v10, %v374_v17 }
  0xe4   : > { %v633_v22 = vpop.f32.mrf.mxu0  ;;  %v637_v23 = vpop.f32.mrf.mxu1 }
  0xe5   : > { %422 = vst.msk [vmem:[%s750_s17 + $0x10] sm:$0xff] %vm419_vm2, %v413_v18  ;;  %v430_v24 = vmax.f32 %v413_v18, 0.0  ;;  %426 = vst.msk [vmem:[%s750_s17 + $0x30] sm:$0xff] %vm419_vm2, %v417_v19  ;;  %v434_v25 = vmax.f32 %v417_v19, 0.0  ;;  %v411_v26 = vadd.f32 %v592_v12, %v396_v20  ;;  %v415_v27 = vadd.f32 %v592_v12, %v400_v21 }
  0xe6   : > { %v399_v28 = vmul.f32 %v633_v22, %v591_v10  ;;  %v403_v29 = vmul.f32 %v637_v23, %v591_v10  ;;  %v361_v30 = vpop.f32.mrf.mxu0  ;;  %v377_v31 = vpop.f32.mrf.mxu1 }
  0xe7   : > { %v605_v32 = vpack.c.bf16 %v430_v24, %v430_v24  ;;  %v609_v33 = vpack.c.bf16 %v434_v25, %v434_v25  ;;  %420 = vst.msk [vmem:[%s750_s17] sm:$0xff] %vm419_vm2, %v411_v26  ;;  %v428_v34 = vmax.f32 %v411_v26, 0.0  ;;  %424 = vst.msk [vmem:[%s750_s17 + $0x20] sm:$0xff] %vm419_vm2, %v415_v27  ;;  %v432_v35 = vmax.f32 %v415_v27, 0.0 }
  0xe8   : > { %v414_v36 = vadd.f32 %v592_v12, %v399_v28  ;;  %v418_v37 = vadd.f32 %v592_v12, %v403_v29  ;;  %v397_v38 = vmul.f32 %v591_v10, %v361_v30  ;;  %v401_v39 = vmul.f32 %v591_v10, %v377_v31 }
  0xe9   : > { %471 = vst.msk [vmem:[%s761_s21 + $0x8] sm:$0xf] %vm468_vm3, %v605_v32  ;;  %475 = vst.msk [vmem:[%s761_s21 + $0x18] sm:$0xf] %vm468_vm3, %v609_v33  ;;  %v603_v40 = vpack.c.bf16 %v428_v34, %v428_v34  ;;  %v607_v41 = vpack.c.bf16 %v432_v35, %v432_v35 }
  0xea   : > { %423 = vst.msk [vmem:[%s750_s17 + $0x18] sm:$0xff] %vm419_vm2, %v414_v36  ;;  %v431_v42 = vmax.f32 %v414_v36, 0.0  ;;  %427 = vst.msk [vmem:[%s750_s17 + $0x38] sm:$0xff] %vm419_vm2, %v418_v37  ;;  %v435_v43 = vmax.f32 %v418_v37, 0.0  ;;  %v412_v44 = vadd.f32 %v592_v12, %v397_v38  ;;  %v416_v45 = vadd.f32 %v592_v12, %v401_v39 }
  0xeb   : > { %469 = vst.msk [vmem:[%s761_s21] sm:$0xf] %vm468_vm3, %v603_v40  ;;  %473 = vst.msk [vmem:[%s761_s21 + $0x10] sm:$0xf] %vm468_vm3, %v607_v41 }
  0xec   : > { %v606_v46 = vpack.c.bf16 %v431_v42, %v431_v42  ;;  %v610_v47 = vpack.c.bf16 %v435_v43, %v435_v43  ;;  %421 = vst.msk [vmem:[%s750_s17 + $0x8] sm:$0xff] %vm419_vm2, %v412_v44  ;;  %v429_v48 = vmax.f32 %v412_v44, 0.0  ;;  %425 = vst.msk [vmem:[%s750_s17 + $0x28] sm:$0xff] %vm419_vm2, %v416_v45  ;;  %v433_v49 = vmax.f32 %v416_v45, 0.0 }
  0xee   : > { %472 = vst.msk [vmem:[%s761_s21 + $0xc] sm:$0xf] %vm468_vm3, %v606_v46  ;;  %476 = vst.msk [vmem:[%s761_s21 + $0x1c] sm:$0xf] %vm468_vm3, %v610_v47  ;;  %v604_v50 = vpack.c.bf16 %v429_v48, %v429_v48  ;;  %v608_v51 = vpack.c.bf16 %v433_v49, %v433_v49 }
  0xf0   : > { %470 = vst.msk [vmem:[%s761_s21 + $0x4] sm:$0xf] %vm468_vm3, %v604_v50  ;;  %474 = vst.msk [vmem:[%s761_s21 + $0x14] sm:$0xf] %vm468_vm3, %v608_v51 }
  0xf1 PF: > { %s16_s18 = sadd.s32 1, %s673_s18  }
  0xf2   : > { %p13_p4 = scmp.ge.s32.totalorder %s16_s18, 4  }
  0xf4   :  { %15 = sbr.rel (!%p13_p4) target bundleno = 1 (0x1), region = 78 }

// kernel: _lambda_.15
= control target key start
LH: loop header
LB: loop body
LE: loop exit
PB: predicated region body
PF: predicated region fallthrough
CT: control target
= control target key end

     0   :  { %s740_s21 = smov 0   ;;  %s834_s0 = inlined_call_operand.vmem [shape: bf16[128,72], index: 0, kind: input, shape index: {}]   ;;  %s835_s1 = inlined_call_operand.vmem [shape: bf16[72,128], index: 1, kind: input, shape index: {}]   ;;  %s836_s2 = inlined_call_operand.vmem [shape: f32[1,128], index: 2, kind: input, shape index: {}]   ;;  %s837_s3 = inlined_call_operand.vmem [shape: f32[1,128], index: 3, kind: input, shape index: {}]   ;;  %s838_s4 = inlined_call_operand.vmem [shape: f32[128,8], index: 4, kind: input, shape index: {}]   ;;  %s839_s5 = inlined_call_operand.vmem [shape: f32[128,8], index: 5, kind: output, shape index: {0}]   ;;  %s840_s6 = inlined_call_operand.vmem [shape: f32[128,8], index: 6, kind: output, shape index: {1}]  }
   0x1 LB: > { %s611_s22 = sadd.s32 4294967295, %s703_s21   ;;  %p615_p0 = scmp.ge.s32.totalorder %s703_s21, 1  ;;  %s703_s21 = sphi %s740_s21, %s17_s21  }
   0x2   : > { %p227_p1 = scmp.lt.s32.totalorder %s703_s21, 3 }
   0x4   : > { %p228_p2 = pnand %p615_p0, %p227_p1 }
   0x5   : > { %s616_s27 = sshll.u32 (!%p228_p2), %s611_s22, 3 }
   0x6   : > { %231 = sbr.rel (%p228_p2) target bundleno = 241 (0xf1), region = 40  ;;  %p268_p3 = scmp.lt.s32.totalorder (!%p228_p2), %s616_s27, 15 }
   0xb   : > { %v688_v0 = vld [vmem:[%s835_s1 + $0x20] ss:$0 sps:$4 sm:$0xff]   ;;  %vm369_vm0 = vcmask 1043456   ;;  %v689_v1 = vld [vmem:[%s835_s1 + $0x18] sm:$0xff]   ;;  %v690_v3 = vld [vmem:[%s835_s1 + $0x10] sm:$0xff]   ;;  %s842_s27 = smov (!%p268_p3, %s616_s27), 15 }
   0xc   : > { %678 = vmatprep.subr.msk.bf16.mxu0 %vm369_vm0, %v688_v0  ;;  %679 = vmatprep.subr.msk.bf16.mxu1 %vm369_vm0, %v688_v0  ;;  %v371_v2 = vsel %vm369_vm0, %v688_v0, 0  ;;  %v691_v4 = vld [vmem:[%s835_s1 + $0x8] sm:$0xff]   ;;  %s617_s8 = sshll.u32 %s842_s27, 2  ;;  %vm356_vm1 = vcmask 588800   ;;  %v692_v7 = vld [vmem:[%s835_s1] sm:$0xff]   ;;  %s619_s14 = sshll.u32 %s842_s27, 3 }
   0xd   : > { %651 = vmatpush3.bf16.msra.mxu0 %v371_v2  ;;  %673 = vmatpush3.bf16.msra.mxu1 %v371_v2  ;;  %s271_s11 = scalar_lea.vmem %s834_s0, %s617_s8  ;;  %v637_v10 = vld [vmem:[%s836_s2] ss:$0 sm:$0xff]  ;;  %s776_s19 = scalar_lea.vmem %s838_s4, %s619_s14  ;;  %vm468_vm2 = vcmask 64512  }
   0xe   : > { %652 = vmatprep.subr.bf16.mxu0 %v689_v1  ;;  %669 = vmatprep.subr.bf16.mxu1 %v689_v1  ;;  %v693_v5 = vld [vmem:[%s271_s11] sm:$0xff]   ;;  %v694_v6 = vld [vmem:[%s271_s11 + $0x10] sm:$0xff]   ;;  %v695_v8 = vld [vmem:[%s271_s11 + $0x8] sm:$0xff]   ;;  %s784_s25 = scalar_lea.vmem %s839_s5, %s619_s14  ;;  %s797_s28 = scalar_lea.vmem %s840_s6, %s619_s14 }
   0xf   : > { %660 = vmatprep.mubr.msk.bf16.mxu0 %vm356_vm1, %v693_v5  ;;  %664 = vmatprep.mubr.msk.bf16.mxu1 %vm356_vm1, %v694_v6  ;;  %v696_v9 = vld [vmem:[%s271_s11 + $0x18] sm:$0xff]   ;;  %v638_v12 = vld [vmem:[%s837_s3] ss:$0 sm:$0xff]  ;;  %v479_v16 = vld [vmem:[%s776_s19 + $0x10] sm:$0xff] }
  0x10   : > { %v483_v17 = vld [vmem:[%s776_s19 + $0x30] sm:$0xff]  ;;  %v477_v24 = vld [vmem:[%s776_s19] sm:$0xff]  ;;  %v480_v40 = vld [vmem:[%s776_s19 + $0x18] sm:$0xff] }
  0x11   : > { %653 = vmatpush3.bf16.msra.mxu0 %v689_v1  ;;  %674 = vmatpush3.bf16.msra.mxu1 %v689_v1  ;;  %v481_v25 = vld [vmem:[%s776_s19 + $0x20] sm:$0xff]  ;;  %v484_v41 = vld [vmem:[%s776_s19 + $0x38] sm:$0xff]  ;;  %v478_v48 = vld [vmem:[%s776_s19 + $0x8] sm:$0xff] }
  0x12   : > { %654 = vmatprep.subr.bf16.mxu0 %v690_v3  ;;  %670 = vmatprep.subr.bf16.mxu1 %v690_v3  ;;  %v482_v49 = vld [vmem:[%s776_s19 + $0x28] sm:$0xff] }
  0x15   : > { %655 = vmatpush3.bf16.msra.mxu0 %v690_v3  ;;  %675 = vmatpush3.bf16.msra.mxu1 %v690_v3 }
  0x16   : > { %656 = vmatprep.subr.bf16.mxu0 %v691_v4  ;;  %671 = vmatprep.subr.bf16.mxu1 %v691_v4 }
  0x19   : > { %657 = vmatpush3.bf16.msra.mxu0 %v691_v4  ;;  %676 = vmatpush3.bf16.msra.mxu1 %v691_v4 }
  0x1a   : > { %658 = vmatprep.subr.bf16.mxu0 %v692_v7  ;;  %672 = vmatprep.subr.bf16.mxu1 %v692_v7 }
  0x1d   : > { %659 = vmatpush3.bf16.msra.mxu0 %v692_v7  ;;  %677 = vmatpush3.bf16.msra.mxu1 %v692_v7 }
  0x20   : > { %661 = vmatmul.mubr.msk.bf16.vlgmr.msra.gmra.mxu0 %vm356_vm1, %v695_v8  ;;  %665 = vmatmul.mubr.msk.bf16.vlgmr.msra.gmra.mxu1 %vm356_vm1, %v696_v9 }
  0xe0   : > { %v662_v11 = vpop.f32.mrf.mxu0  ;;  %v666_v13 = vpop.f32.mrf.mxu1 }
  0xe1   : > { %v447_v14 = vmul.f32 %v662_v11, %v637_v10  ;;  %v451_v15 = vmul.f32 %v666_v13, %v637_v10 }
  0xe2   : > { %v407_v18 = vpop.f32.mrf.mxu0  ;;  %v423_v19 = vpop.f32.mrf.mxu1 }
  0xe3   : > { %v462_v20 = vadd.f32 %v638_v12, %v447_v14  ;;  %v466_v21 = vadd.f32 %v638_v12, %v451_v15  ;;  %v445_v22 = vmul.f32 %v637_v10, %v407_v18  ;;  %v449_v23 = vmul.f32 %v637_v10, %v423_v19 }
  0xe4   : > { %v663_v26 = vpop.f32.mrf.mxu0  ;;  %v667_v27 = vpop.f32.mrf.mxu1 }
  0xe5   : > { %471 = vst.msk [vmem:[%s784_s25 + $0x10] sm:$0xff] %vm468_vm2, %v462_v20  ;;  %v487_v28 = vadd.f32 %v479_v16, %v462_v20  ;;  %475 = vst.msk [vmem:[%s784_s25 + $0x30] sm:$0xff] %vm468_vm2, %v466_v21  ;;  %v491_v29 = vadd.f32 %v483_v17, %v466_v21  ;;  %v460_v30 = vadd.f32 %v638_v12, %v445_v22 }
  0xe6   : > { %v464_v31 = vadd.f32 %v638_v12, %v449_v23  ;;  %v448_v32 = vmul.f32 %v663_v26, %v637_v10  ;;  %v452_v33 = vmul.f32 %v667_v27, %v637_v10  ;;  %v410_v34 = vpop.f32.mrf.mxu0  ;;  %v426_v35 = vpop.f32.mrf.mxu1 }
  0xe7   : > { %v495_v36 = vmax.f32 %v487_v28, 0.0  ;;  %v499_v37 = vmax.f32 %v491_v29, 0.0  ;;  %469 = vst.msk [vmem:[%s784_s25] sm:$0xff] %vm468_vm2, %v460_v30  ;;  %v485_v38 = vadd.f32 %v477_v24, %v460_v30  ;;  %v446_v44 = vmul.f32 %v637_v10, %v410_v34 }
  0xe8   : > { %473 = vst.msk [vmem:[%s784_s25 + $0x20] sm:$0xff] %vm468_vm2, %v464_v31  ;;  %v489_v39 = vadd.f32 %v481_v25, %v464_v31  ;;  %v463_v42 = vadd.f32 %v638_v12, %v448_v32  ;;  %v467_v43 = vadd.f32 %v638_v12, %v452_v33  ;;  %v450_v45 = vmul.f32 %v637_v10, %v426_v35 }
  0xe9   : > { %503 = vst.msk [vmem:[%s797_s28 + $0x10] sm:$0xff] %vm468_vm2, %v495_v36  ;;  %507 = vst.msk [vmem:[%s797_s28 + $0x30] sm:$0xff] %vm468_vm2, %v499_v37  ;;  %v493_v46 = vmax.f32 %v485_v38, 0.0  ;;  %v461_v52 = vadd.f32 %v638_v12, %v446_v44 }
  0xea   : > { %v497_v47 = vmax.f32 %v489_v39, 0.0  ;;  %472 = vst.msk [vmem:[%s784_s25 + $0x18] sm:$0xff] %vm468_vm2, %v463_v42  ;;  %v488_v50 = vadd.f32 %v480_v40, %v463_v42  ;;  %476 = vst.msk [vmem:[%s784_s25 + $0x38] sm:$0xff] %vm468_vm2, %v467_v43  ;;  %v492_v51 = vadd.f32 %v484_v41, %v467_v43  ;;  %v465_v53 = vadd.f32 %v638_v12, %v450_v45 }
  0xeb   : > { %501 = vst.msk [vmem:[%s797_s28] sm:$0xff] %vm468_vm2, %v493_v46  ;;  %470 = vst.msk [vmem:[%s784_s25 + $0x8] sm:$0xff] %vm468_vm2, %v461_v52  ;;  %v486_v56 = vadd.f32 %v478_v48, %v461_v52 }
  0xec   : > { %505 = vst.msk [vmem:[%s797_s28 + $0x20] sm:$0xff] %vm468_vm2, %v497_v47  ;;  %v496_v54 = vmax.f32 %v488_v50, 0.0  ;;  %v500_v55 = vmax.f32 %v492_v51, 0.0  ;;  %474 = vst.msk [vmem:[%s784_s25 + $0x28] sm:$0xff] %vm468_vm2, %v465_v53  ;;  %v490_v57 = vadd.f32 %v482_v49, %v465_v53 }
  0xed   : > { %v494_v58 = vmax.f32 %v486_v56, 0.0 }
  0xee   : > { %504 = vst.msk [vmem:[%s797_s28 + $0x18] sm:$0xff] %vm468_vm2, %v496_v54  ;;  %508 = vst.msk [vmem:[%s797_s28 + $0x38] sm:$0xff] %vm468_vm2, %v500_v55  ;;  %v498_v59 = vmax.f32 %v490_v57, 0.0 }
  0xef   : > { %502 = vst.msk [vmem:[%s797_s28 + $0x8] sm:$0xff] %vm468_vm2, %v494_v58 }
  0xf0   : > { %506 = vst.msk [vmem:[%s797_s28 + $0x28] sm:$0xff] %vm468_vm2, %v498_v59 }
  0xf1 PF: > { %s17_s21 = sadd.s32 1, %s703_s21  }
  0xf2   : > { %p14_p4 = scmp.ge.s32.totalorder %s17_s21, 4  }
  0xf4   :  { %16 = sbr.rel (!%p14_p4) target bundleno = 1 (0x1), region = 85 }

</bundles_post_ra>
